<compile_context>
chip_gen: v7x
topology: tpu7x:2x2x1
jax: 0.10.0
libtpu: 0.0.40
codegen_flags: <defaults>
</compile_context>

<pallas_src>
import functools

import jax
import jax.numpy as jnp
from jax.experimental import pallas as pl
from jax.experimental.pallas import tpu as pltpu


MXU_DTYPE = jnp.bfloat16  # MXU operand dtype; accumulation & elementwise stay float32.


def _fused_lstm_kernel(*refs, seq_len, hidden, num_layers):
    """Fused multi-layer LSTM over the (single) returned batch row.

    refs (L > 1):  x(T,E), wih0(E,4H), wih_rest(L-1,4H,4H), whh(L,4H,4H), b(L,1,4H),
                   out(T,4H), gx_scratch(T,4H)
    refs (L == 1): same without wih_rest.
    Gate order follows PyTorch: [i, f, g, o] along the 4H lane axis; the g rows/lanes of
    the weights and bias were pre-scaled by 2 so tanh(g) == 2*sigmoid(gates_g) - 1.
    Invariant: rows [H:4H) of wih_rest / whh are zero so the junk lanes [H:4H) of the
    4H-wide h/c never contribute to any gate.
    """
    T, H, L = seq_len, hidden, num_layers
    H4 = 4 * H
    if L > 1:
        x_ref, wih0_ref, wih_rest_ref, whh_ref, b_ref, out_ref, gx_ref = refs
    else:
        x_ref, wih0_ref, whh_ref, b_ref, out_ref, gx_ref = refs
        wih_rest_ref = None
    mxu_dtype = x_ref.dtype

    # Layer-0 input projection hoisted off the recurrence: one (T, E) @ (E, 4H) matmul
    # with the bias folded in, staged in VMEM scratch (indexed per step below).
    gx_ref[...] = (
        jnp.dot(x_ref[...], wih0_ref[...], preferred_element_type=jnp.float32)
        + b_ref[0])

    # Per-layer recurrent state, kept 4H (= 128 at H=32) lanes wide.  Lanes [H:4H) hold
    # bounded junk; the zero weight rows keep it inert.
    h = [jnp.zeros((1, H4), jnp.float32) for _ in range(L)]
    c = [jnp.zeros((1, H4), jnp.float32) for _ in range(L)]

    for t in range(T):                       # static unroll: T is small & static
        for layer in range(L):
            if layer == 0:
                gates_x = gx_ref[pl.ds(t, 1), :]                       # (1, 4H)
            else:
                # Wavefront: issued as soon as h[layer-1] for this step exists.
                gates_x = jnp.dot(h[layer - 1].astype(mxu_dtype),
                                  wih_rest_ref[layer - 1],
                                  preferred_element_type=jnp.float32) + b_ref[layer]
            gates = gates_x + jnp.dot(h[layer].astype(mxu_dtype), whh_ref[layer],
                                      preferred_element_type=jnp.float32)   # (1, 4H)
            # Lanes: [i | f | 2g | o]  (g pre-scaled by 2 in the wrapper).
            sig = jax.nn.sigmoid(gates)          # single full-width EUP pass
            th = 2.0 * sig - 1.0                 # VPU fma; lanes [2H:3H) == tanh(g)
            f_al = pltpu.roll(sig, shift=3 * H, axis=1)   # f       -> lanes [0:H)
            g_al = pltpu.roll(th, shift=2 * H, axis=1)    # tanh(g) -> lanes [0:H)
            o_al = pltpu.roll(sig, shift=1 * H, axis=1)   # o       -> lanes [0:H)
            c[layer] = f_al * c[layer] + sig * g_al       # lanes [0:H) valid
            h[layer] = o_al * jnp.tanh(c[layer])
        # Lane-dense (1, 128) store of the top layer's step output; wrapper takes [:, :H].
        out_ref[pl.ds(t, 1), :] = h[L - 1]
    # TODO(synk): for H >= 128 / long T, hold W_hh resident via pltpu.matmul_push_rhs and
    # drive the time loop with lax.fori_loop(..., unroll=k) over a chunked grid.


@jax.jit
def image_encoder_lstm_forward(imfeatures, params):
    """Equivalent of Image_Encoder_LSTM.forward.

    imfeatures: (B, T, E).  nn.LSTM(batch_first=True) output is (B, T, H); the module
    returns output[-1] = the LAST batch element's hidden states over time -> (T, H).
    Only that batch row is computed.
    """
    B, T, E = imfeatures.shape
    L = len(params)
    H = params[0][1].shape[1]        # w_hh layer 0: (4H, H)
    H4 = 4 * H

    def scale_g(w):
        # Scale the g-gate output rows of a PyTorch-layout (4H, Din) weight by 2
        # (exact: pure exponent shift) to enable tanh(g) = 2*sigmoid(2g) - 1 in-kernel.
        return w.at[2 * H:3 * H, :].multiply(2.0)

    # Only the returned batch row (output[-1]) is computed.
    x_last = imfeatures[B - 1].astype(MXU_DTYPE)                               # (T, E)

    wih0 = jnp.transpose(scale_g(params[0][0])).astype(MXU_DTYPE)              # (E, 4H)

    whh_stack = jnp.stack(
        [jnp.transpose(scale_g(p[1])) for p in params]).astype(MXU_DTYPE)      # (L, H, 4H)
    whh = jnp.zeros((L, H4, H4), MXU_DTYPE).at[:, :H, :].set(whh_stack)

    bias = jnp.stack(
        [((p[2] + p[3]).astype(jnp.float32).at[2 * H:3 * H].multiply(2.0))[None, :]
         for p in params])                                                     # (L, 1, 4H)

    args = [x_last, wih0]
    if L > 1:
        wih_r = jnp.stack(
            [jnp.transpose(scale_g(p[0])) for p in params[1:]]).astype(MXU_DTYPE)  # (L-1,H,4H)
        wih_rest = jnp.zeros((L - 1, H4, H4), MXU_DTYPE).at[:, :H, :].set(wih_r)
        args.append(wih_rest)
    args += [whh, bias]

    kernel = functools.partial(_fused_lstm_kernel, seq_len=T, hidden=H, num_layers=L)
    vmem = pl.BlockSpec(memory_space=pltpu.MemorySpace.VMEM)
    out = pl.pallas_call(
        kernel,
        out_shape=jax.ShapeDtypeStruct((T, H4), jnp.float32),   # lane-dense (T, 128)
        in_specs=[vmem] * len(args),
        out_specs=vmem,
        scratch_shapes=[pltpu.VMEM((T, H4), jnp.float32)],      # staged layer-0 projection
    )(*args)
    return out[:, :H]                                           # (T, H)


def _xavier_uniform(key, shape):
    fan_out, fan_in = shape
    bound = (6.0 / (fan_in + fan_out)) ** 0.5
    return jax.random.uniform(key, shape, jnp.float32, -bound, bound)


def init_image_encoder_lstm_params(key, embedding_size, hidden_size, num_layers):
    """Parameter init mirroring the PyTorch module: layer-0 weight matrices use
    xavier_uniform (init_weights); everything else uses U(-1/sqrt(H), 1/sqrt(H))."""
    params = []
    k = 1.0 / (hidden_size ** 0.5)
    for layer in range(num_layers):
        din = embedding_size if layer == 0 else hidden_size
        key, k1, k2, k3, k4 = jax.random.split(key, 5)
        if layer == 0:
            w_ih = _xavier_uniform(k1, (4 * hidden_size, din))
            w_hh = _xavier_uniform(k2, (4 * hidden_size, hidden_size))
        else:
            w_ih = jax.random.uniform(k1, (4 * hidden_size, din), jnp.float32, -k, k)
            w_hh = jax.random.uniform(k2, (4 * hidden_size, hidden_size), jnp.float32, -k, k)
        b_ih = jax.random.uniform(k3, (4 * hidden_size,), jnp.float32, -k, k)
        b_hh = jax.random.uniform(k4, (4 * hidden_size,), jnp.float32, -k, k)
        params.append((w_ih, w_hh, b_ih, b_hh))
    return params


def lstm_reference(imfeatures, params):
    """Pure-JAX full-batch reference with the same dtype policy (bf16 MXU, f32 accum),
    unscaled weights and a real tanh; returns output[-1] like the PyTorch module."""
    B, T, _ = imfeatures.shape
    H = params[0][1].shape[1]
    h_seq = imfeatures
    for (w_ih, w_hh, b_ih, b_hh) in params:
        wih_t = jnp.transpose(w_ih).astype(MXU_DTYPE)
        whh_t = jnp.transpose(w_hh).astype(MXU_DTYPE)
        b = (b_ih + b_hh).astype(jnp.float32)
        h = jnp.zeros((B, H), jnp.float32)
        c = jnp.zeros((B, H), jnp.float32)
        outs = []
        for t in range(T):
            x_t = h_seq[:, t, :].astype(MXU_DTYPE)
            gates = (jnp.dot(x_t, wih_t, preferred_element_type=jnp.float32)
                     + jnp.dot(h.astype(MXU_DTYPE), whh_t, preferred_element_type=jnp.float32)
                     + b)
            i = jax.nn.sigmoid(gates[:, 0:H])
            f = jax.nn.sigmoid(gates[:, H:2 * H])
            g = jnp.tanh(gates[:, 2 * H:3 * H])
            o = jax.nn.sigmoid(gates[:, 3 * H:4 * H])
            c = f * c + i * g
            h = o * jnp.tanh(c)
            outs.append(h)
        h_seq = jnp.stack(outs, axis=1)  # (B, T, H)
    return h_seq[-1]                     # (T, H) — PyTorch output[-1]


if __name__ == "__main__":
    batch = 2
    seq = 8
    embedding_size = 16
    hidden_size = 32
    num_layers = 2

    key = jax.random.PRNGKey(0)
    key, pkey, xkey = jax.random.split(key, 3)
    params = init_image_encoder_lstm_params(pkey, embedding_size, hidden_size, num_layers)
    imfeatures = jax.random.normal(xkey, (batch, seq, embedding_size), jnp.float32)

    out = image_encoder_lstm_forward(imfeatures, params)
    out = jax.block_until_ready(out)
    assert out.shape == (seq, hidden_size), out.shape

    ref = jax.block_until_ready(jax.jit(lstm_reference)(imfeatures, params))
    assert jnp.allclose(out, ref, atol=5e-3, rtol=5e-3), float(jnp.max(jnp.abs(out - ref)))
    print("KERNEL_OK")
</pallas_src>

<mosaic_0001>
module attributes {stable_mosaic.version = 11 : i64} {
  func.func @_fused_lstm_kernel(%arg0: memref<8x16xbf16, #tpu.memory_space<vmem>>, %arg1: memref<16x128xbf16, #tpu.memory_space<vmem>>, %arg2: memref<1x128x128xbf16, #tpu.memory_space<vmem>>, %arg3: memref<2x128x128xbf16, #tpu.memory_space<vmem>>, %arg4: memref<2x1x128xf32, #tpu.memory_space<vmem>>, %arg5: memref<8x128xf32, #tpu.memory_space<vmem>>, %arg6: memref<8x128xf32, #tpu.memory_space<vmem>>) attributes {dimension_semantics = [], scalar_prefetch = 0 : i64, scratch_operands = 1 : i64, tpu.core_type = #tpu.core_type<tc>} {
    %c0 = arith.constant 0 : index
    %c0_0 = arith.constant 0 : index
    %0 = vector.load %arg0[%c0, %c0_0] : memref<8x16xbf16, #tpu.memory_space<vmem>>, vector<8x16xbf16>
    %c0_1 = arith.constant 0 : index
    %c0_2 = arith.constant 0 : index
    %1 = vector.load %arg1[%c0_1, %c0_2] : memref<16x128xbf16, #tpu.memory_space<vmem>>, vector<16x128xbf16>
    %cst = arith.constant dense<0.000000e+00> : vector<8x128xf32>
    %2 = tpu.matmul %0, %1, %cst {dimension_numbers = #tpu.dot_dimension_numbers<[1], [0], [0], [1], [0, 0, 1, 1], [], []>} : vector<8x16xbf16>, vector<16x128xbf16>, vector<8x128xf32> -> vector<8x128xf32>
    %c0_3 = arith.constant 0 : index
    %c0_4 = arith.constant 0 : index
    %c0_5 = arith.constant 0 : index
    %3 = vector.load %arg4[%c0_3, %c0_4, %c0_5] : memref<2x1x128xf32, #tpu.memory_space<vmem>>, vector<1x1x128xf32>
    %4 = vector.shape_cast %3 : vector<1x1x128xf32> to vector<1x128xf32>
    %5 = vector.broadcast %4 : vector<1x128xf32> to vector<8x128xf32>
    %6 = arith.addf %2, %5 : vector<8x128xf32>
    %c0_6 = arith.constant 0 : index
    %c0_7 = arith.constant 0 : index
    %7 = vector.load %arg6[%c0_6, %c0_7] : memref<8x128xf32, #tpu.memory_space<vmem>>, vector<8x128xf32>
    tpu.vector_store %arg6[%c0_6, %c0_7], %6 {strides = array<i32>} : memref<8x128xf32, #tpu.memory_space<vmem>>, vector<8x128xf32>,
    %cst_8 = arith.constant 0.000000e+00 : f32
    %8 = vector.broadcast %cst_8 : f32 to vector<1x128xf32>
    %cst_9 = arith.constant 0.000000e+00 : f32
    %9 = vector.broadcast %cst_9 : f32 to vector<1x128xf32>
    %cst_10 = arith.constant 0.000000e+00 : f32
    %10 = vector.broadcast %cst_10 : f32 to vector<1x128xf32>
    %cst_11 = arith.constant 0.000000e+00 : f32
    %11 = vector.broadcast %cst_11 : f32 to vector<1x128xf32>
    %c0_12 = arith.constant 0 : index
    %c0_13 = arith.constant 0 : index
    %12 = vector.load %arg6[%c0_12, %c0_13] : memref<8x128xf32, #tpu.memory_space<vmem>>, vector<1x128xf32>
    %13 = arith.truncf %8 : vector<1x128xf32> to vector<1x128xbf16>
    %c0_14 = arith.constant 0 : index
    %c0_15 = arith.constant 0 : index
    %c0_16 = arith.constant 0 : index
    %14 = vector.load %arg3[%c0_14, %c0_15, %c0_16] : memref<2x128x128xbf16, #tpu.memory_space<vmem>>, vector<1x128x128xbf16>
    %15 = vector.shape_cast %14 : vector<1x128x128xbf16> to vector<128x128xbf16>
    %cst_17 = arith.constant dense<0.000000e+00> : vector<1x128xf32>
    %16 = tpu.matmul %13, %15, %cst_17 {dimension_numbers = #tpu.dot_dimension_numbers<[1], [0], [0], [1], [0, 0, 1, 1], [], []>} : vector<1x128xbf16>, vector<128x128xbf16>, vector<1x128xf32> -> vector<1x128xf32>
    %17 = arith.addf %12, %16 : vector<1x128xf32>
    %18 = arith.negf %17 : vector<1x128xf32>
    %19 = math.exp %18 : vector<1x128xf32>
    %cst_18 = arith.constant 1.000000e+00 : f32
    %20 = vector.broadcast %cst_18 : f32 to vector<1x128xf32>
    %21 = arith.addf %20, %19 : vector<1x128xf32>
    %22 = arith.divf %20, %21 : vector<1x128xf32>
    %cst_19 = arith.constant 2.000000e+00 : f32
    %23 = vector.broadcast %cst_19 : f32 to vector<1x128xf32>
    %24 = arith.mulf %23, %22 : vector<1x128xf32>
    %cst_20 = arith.constant 1.000000e+00 : f32
    %25 = vector.broadcast %cst_20 : f32 to vector<1x128xf32>
    %26 = arith.subf %24, %25 : vector<1x128xf32>
    %c96_i32 = arith.constant 96 : i32
    %27 = tpu.dynamic_rotate %22 by %c96_i32 dim 1 : vector<1x128xf32>, i32 -> vector<1x128xf32>
    %c64_i32 = arith.constant 64 : i32
    %28 = tpu.dynamic_rotate %26 by %c64_i32 dim 1 : vector<1x128xf32>, i32 -> vector<1x128xf32>
    %c32_i32 = arith.constant 32 : i32
    %29 = tpu.dynamic_rotate %22 by %c32_i32 dim 1 : vector<1x128xf32>, i32 -> vector<1x128xf32>
    %30 = arith.mulf %27, %10 : vector<1x128xf32>
    %31 = arith.mulf %22, %28 : vector<1x128xf32>
    %32 = arith.addf %30, %31 : vector<1x128xf32>
    %33 = math.tanh %32 : vector<1x128xf32>
    %34 = arith.mulf %29, %33 : vector<1x128xf32>
    %35 = arith.truncf %34 : vector<1x128xf32> to vector<1x128xbf16>
    %c0_21 = arith.constant 0 : index
    %c0_22 = arith.constant 0 : index
    %c0_23 = arith.constant 0 : index
    %36 = vector.load %arg2[%c0_21, %c0_22, %c0_23] : memref<1x128x128xbf16, #tpu.memory_space<vmem>>, vector<1x128x128xbf16>
    %37 = vector.shape_cast %36 : vector<1x128x128xbf16> to vector<128x128xbf16>
    %cst_24 = arith.constant dense<0.000000e+00> : vector<1x128xf32>
    %38 = tpu.matmul %35, %37, %cst_24 {dimension_numbers = #tpu.dot_dimension_numbers<[1], [0], [0], [1], [0, 0, 1, 1], [], []>} : vector<1x128xbf16>, vector<128x128xbf16>, vector<1x128xf32> -> vector<1x128xf32>
    %c1 = arith.constant 1 : index
    %c0_25 = arith.constant 0 : index
    %c0_26 = arith.constant 0 : index
    %39 = vector.load %arg4[%c1, %c0_25, %c0_26] : memref<2x1x128xf32, #tpu.memory_space<vmem>>, vector<1x1x128xf32>
    %40 = vector.shape_cast %39 : vector<1x1x128xf32> to vector<1x128xf32>
    %41 = arith.addf %38, %40 : vector<1x128xf32>
    %42 = arith.truncf %9 : vector<1x128xf32> to vector<1x128xbf16>
    %c1_27 = arith.constant 1 : index
    %c0_28 = arith.constant 0 : index
    %c0_29 = arith.constant 0 : index
    %43 = vector.load %arg3[%c1_27, %c0_28, %c0_29] : memref<2x128x128xbf16, #tpu.memory_space<vmem>>, vector<1x128x128xbf16>
    %44 = vector.shape_cast %43 : vector<1x128x128xbf16> to vector<128x128xbf16>
    %cst_30 = arith.constant dense<0.000000e+00> : vector<1x128xf32>
    %45 = tpu.matmul %42, %44, %cst_30 {dimension_numbers = #tpu.dot_dimension_numbers<[1], [0], [0], [1], [0, 0, 1, 1], [], []>} : vector<1x128xbf16>, vector<128x128xbf16>, vector<1x128xf32> -> vector<1x128xf32>
    %46 = arith.addf %41, %45 : vector<1x128xf32>
    %47 = arith.negf %46 : vector<1x128xf32>
    %48 = math.exp %47 : vector<1x128xf32>
    %cst_31 = arith.constant 1.000000e+00 : f32
    %49 = vector.broadcast %cst_31 : f32 to vector<1x128xf32>
    %50 = arith.addf %49, %48 : vector<1x128xf32>
    %51 = arith.divf %49, %50 : vector<1x128xf32>
    %cst_32 = arith.constant 2.000000e+00 : f32
    %52 = vector.broadcast %cst_32 : f32 to vector<1x128xf32>
    %53 = arith.mulf %52, %51 : vector<1x128xf32>
    %cst_33 = arith.constant 1.000000e+00 : f32
    %54 = vector.broadcast %cst_33 : f32 to vector<1x128xf32>
    %55 = arith.subf %53, %54 : vector<1x128xf32>
    %c96_i32_34 = arith.constant 96 : i32
    %56 = tpu.dynamic_rotate %51 by %c96_i32_34 dim 1 : vector<1x128xf32>, i32 -> vector<1x128xf32>
    %c64_i32_35 = arith.constant 64 : i32
    %57 = tpu.dynamic_rotate %55 by %c64_i32_35 dim 1 : vector<1x128xf32>, i32 -> vector<1x128xf32>
    %c32_i32_36 = arith.constant 32 : i32
    %58 = tpu.dynamic_rotate %51 by %c32_i32_36 dim 1 : vector<1x128xf32>, i32 -> vector<1x128xf32>
    %59 = arith.mulf %56, %11 : vector<1x128xf32>
    %60 = arith.mulf %51, %57 : vector<1x128xf32>
    %61 = arith.addf %59, %60 : vector<1x128xf32>
    %62 = math.tanh %61 : vector<1x128xf32>
    %63 = arith.mulf %58, %62 : vector<1x128xf32>
    %c0_37 = arith.constant 0 : index
    %c0_38 = arith.constant 0 : index
    %64 = vector.load %arg5[%c0_37, %c0_38] : memref<8x128xf32, #tpu.memory_space<vmem>>, vector<1x128xf32>
    tpu.vector_store %arg5[%c0_37, %c0_38], %63 {strides = array<i32>} : memref<8x128xf32, #tpu.memory_space<vmem>>, vector<1x128xf32>,
    %c1_39 = arith.constant 1 : index
    %c0_40 = arith.constant 0 : index
    %65 = vector.load %arg6[%c1_39, %c0_40] : memref<8x128xf32, #tpu.memory_space<vmem>>, vector<1x128xf32>
    %66 = arith.truncf %34 : vector<1x128xf32> to vector<1x128xbf16>
    %c0_41 = arith.constant 0 : index
    %c0_42 = arith.constant 0 : index
    %c0_43 = arith.constant 0 : index
    %67 = vector.load %arg3[%c0_41, %c0_42, %c0_43] : memref<2x128x128xbf16, #tpu.memory_space<vmem>>, vector<1x128x128xbf16>
    %68 = vector.shape_cast %67 : vector<1x128x128xbf16> to vector<128x128xbf16>
    %cst_44 = arith.constant dense<0.000000e+00> : vector<1x128xf32>
    %69 = tpu.matmul %66, %68, %cst_44 {dimension_numbers = #tpu.dot_dimension_numbers<[1], [0], [0], [1], [0, 0, 1, 1], [], []>} : vector<1x128xbf16>, vector<128x128xbf16>, vector<1x128xf32> -> vector<1x128xf32>
    %70 = arith.addf %65, %69 : vector<1x128xf32>
    %71 = arith.negf %70 : vector<1x128xf32>
    %72 = math.exp %71 : vector<1x128xf32>
    %cst_45 = arith.constant 1.000000e+00 : f32
    %73 = vector.broadcast %cst_45 : f32 to vector<1x128xf32>
    %74 = arith.addf %73, %72 : vector<1x128xf32>
    %75 = arith.divf %73, %74 : vector<1x128xf32>
    %cst_46 = arith.constant 2.000000e+00 : f32
    %76 = vector.broadcast %cst_46 : f32 to vector<1x128xf32>
    %77 = arith.mulf %76, %75 : vector<1x128xf32>
    %cst_47 = arith.constant 1.000000e+00 : f32
    %78 = vector.broadcast %cst_47 : f32 to vector<1x128xf32>
    %79 = arith.subf %77, %78 : vector<1x128xf32>
    %c96_i32_48 = arith.constant 96 : i32
    %80 = tpu.dynamic_rotate %75 by %c96_i32_48 dim 1 : vector<1x128xf32>, i32 -> vector<1x128xf32>
    %c64_i32_49 = arith.constant 64 : i32
    %81 = tpu.dynamic_rotate %79 by %c64_i32_49 dim 1 : vector<1x128xf32>, i32 -> vector<1x128xf32>
    %c32_i32_50 = arith.constant 32 : i32
    %82 = tpu.dynamic_rotate %75 by %c32_i32_50 dim 1 : vector<1x128xf32>, i32 -> vector<1x128xf32>
    %83 = arith.mulf %80, %32 : vector<1x128xf32>
    %84 = arith.mulf %75, %81 : vector<1x128xf32>
    %85 = arith.addf %83, %84 : vector<1x128xf32>
    %86 = math.tanh %85 : vector<1x128xf32>
    %87 = arith.mulf %82, %86 : vector<1x128xf32>
    %88 = arith.truncf %87 : vector<1x128xf32> to vector<1x128xbf16>
    %c0_51 = arith.constant 0 : index
    %c0_52 = arith.constant 0 : index
    %c0_53 = arith.constant 0 : index
    %89 = vector.load %arg2[%c0_51, %c0_52, %c0_53] : memref<1x128x128xbf16, #tpu.memory_space<vmem>>, vector<1x128x128xbf16>
    %90 = vector.shape_cast %89 : vector<1x128x128xbf16> to vector<128x128xbf16>
    %cst_54 = arith.constant dense<0.000000e+00> : vector<1x128xf32>
    %91 = tpu.matmul %88, %90, %cst_54 {dimension_numbers = #tpu.dot_dimension_numbers<[1], [0], [0], [1], [0, 0, 1, 1], [], []>} : vector<1x128xbf16>, vector<128x128xbf16>, vector<1x128xf32> -> vector<1x128xf32>
    %c1_55 = arith.constant 1 : index
    %c0_56 = arith.constant 0 : index
    %c0_57 = arith.constant 0 : index
    %92 = vector.load %arg4[%c1_55, %c0_56, %c0_57] : memref<2x1x128xf32, #tpu.memory_space<vmem>>, vector<1x1x128xf32>
    %93 = vector.shape_cast %92 : vector<1x1x128xf32> to vector<1x128xf32>
    %94 = arith.addf %91, %93 : vector<1x128xf32>
    %95 = arith.truncf %63 : vector<1x128xf32> to vector<1x128xbf16>
    %c1_58 = arith.constant 1 : index
    %c0_59 = arith.constant 0 : index
    %c0_60 = arith.constant 0 : index
    %96 = vector.load %arg3[%c1_58, %c0_59, %c0_60] : memref<2x128x128xbf16, #tpu.memory_space<vmem>>, vector<1x128x128xbf16>
    %97 = vector.shape_cast %96 : vector<1x128x128xbf16> to vector<128x128xbf16>
    %cst_61 = arith.constant dense<0.000000e+00> : vector<1x128xf32>
    %98 = tpu.matmul %95, %97, %cst_61 {dimension_numbers = #tpu.dot_dimension_numbers<[1], [0], [0], [1], [0, 0, 1, 1], [], []>} : vector<1x128xbf16>, vector<128x128xbf16>, vector<1x128xf32> -> vector<1x128xf32>
    %99 = arith.addf %94, %98 : vector<1x128xf32>
    %100 = arith.negf %99 : vector<1x128xf32>
    %101 = math.exp %100 : vector<1x128xf32>
    %cst_62 = arith.constant 1.000000e+00 : f32
    %102 = vector.broadcast %cst_62 : f32 to vector<1x128xf32>
    %103 = arith.addf %102, %101 : vector<1x128xf32>
    %104 = arith.divf %102, %103 : vector<1x128xf32>
    %cst_63 = arith.constant 2.000000e+00 : f32
    %105 = vector.broadcast %cst_63 : f32 to vector<1x128xf32>
    %106 = arith.mulf %105, %104 : vector<1x128xf32>
    %cst_64 = arith.constant 1.000000e+00 : f32
    %107 = vector.broadcast %cst_64 : f32 to vector<1x128xf32>
    %108 = arith.subf %106, %107 : vector<1x128xf32>
    %c96_i32_65 = arith.constant 96 : i32
    %109 = tpu.dynamic_rotate %104 by %c96_i32_65 dim 1 : vector<1x128xf32>, i32 -> vector<1x128xf32>
    %c64_i32_66 = arith.constant 64 : i32
    %110 = tpu.dynamic_rotate %108 by %c64_i32_66 dim 1 : vector<1x128xf32>, i32 -> vector<1x128xf32>
    %c32_i32_67 = arith.constant 32 : i32
    %111 = tpu.dynamic_rotate %104 by %c32_i32_67 dim 1 : vector<1x128xf32>, i32 -> vector<1x128xf32>
    %112 = arith.mulf %109, %61 : vector<1x128xf32>
    %113 = arith.mulf %104, %110 : vector<1x128xf32>
    %114 = arith.addf %112, %113 : vector<1x128xf32>
    %115 = math.tanh %114 : vector<1x128xf32>
    %116 = arith.mulf %111, %115 : vector<1x128xf32>
    %c1_68 = arith.constant 1 : index
    %c0_69 = arith.constant 0 : index
    %117 = vector.load %arg5[%c1_68, %c0_69] : memref<8x128xf32, #tpu.memory_space<vmem>>, vector<1x128xf32>
    tpu.vector_store %arg5[%c1_68, %c0_69], %116 {strides = array<i32>} : memref<8x128xf32, #tpu.memory_space<vmem>>, vector<1x128xf32>,
    %c2 = arith.constant 2 : index
    %c0_70 = arith.constant 0 : index
    %118 = vector.load %arg6[%c2, %c0_70] : memref<8x128xf32, #tpu.memory_space<vmem>>, vector<1x128xf32>
    %119 = arith.truncf %87 : vector<1x128xf32> to vector<1x128xbf16>
    %c0_71 = arith.constant 0 : index
    %c0_72 = arith.constant 0 : index
    %c0_73 = arith.constant 0 : index
    %120 = vector.load %arg3[%c0_71, %c0_72, %c0_73] : memref<2x128x128xbf16, #tpu.memory_space<vmem>>, vector<1x128x128xbf16>
    %121 = vector.shape_cast %120 : vector<1x128x128xbf16> to vector<128x128xbf16>
    %cst_74 = arith.constant dense<0.000000e+00> : vector<1x128xf32>
    %122 = tpu.matmul %119, %121, %cst_74 {dimension_numbers = #tpu.dot_dimension_numbers<[1], [0], [0], [1], [0, 0, 1, 1], [], []>} : vector<1x128xbf16>, vector<128x128xbf16>, vector<1x128xf32> -> vector<1x128xf32>
    %123 = arith.addf %118, %122 : vector<1x128xf32>
    %124 = arith.negf %123 : vector<1x128xf32>
    %125 = math.exp %124 : vector<1x128xf32>
    %cst_75 = arith.constant 1.000000e+00 : f32
    %126 = vector.broadcast %cst_75 : f32 to vector<1x128xf32>
    %127 = arith.addf %126, %125 : vector<1x128xf32>
    %128 = arith.divf %126, %127 : vector<1x128xf32>
    %cst_76 = arith.constant 2.000000e+00 : f32
    %129 = vector.broadcast %cst_76 : f32 to vector<1x128xf32>
    %130 = arith.mulf %129, %128 : vector<1x128xf32>
    %cst_77 = arith.constant 1.000000e+00 : f32
    %131 = vector.broadcast %cst_77 : f32 to vector<1x128xf32>
    %132 = arith.subf %130, %131 : vector<1x128xf32>
    %c96_i32_78 = arith.constant 96 : i32
    %133 = tpu.dynamic_rotate %128 by %c96_i32_78 dim 1 : vector<1x128xf32>, i32 -> vector<1x128xf32>
    %c64_i32_79 = arith.constant 64 : i32
    %134 = tpu.dynamic_rotate %132 by %c64_i32_79 dim 1 : vector<1x128xf32>, i32 -> vector<1x128xf32>
    %c32_i32_80 = arith.constant 32 : i32
    %135 = tpu.dynamic_rotate %128 by %c32_i32_80 dim 1 : vector<1x128xf32>, i32 -> vector<1x128xf32>
    %136 = arith.mulf %133, %85 : vector<1x128xf32>
    %137 = arith.mulf %128, %134 : vector<1x128xf32>
    %138 = arith.addf %136, %137 : vector<1x128xf32>
    %139 = math.tanh %138 : vector<1x128xf32>
    %140 = arith.mulf %135, %139 : vector<1x128xf32>
    %141 = arith.truncf %140 : vector<1x128xf32> to vector<1x128xbf16>
    %c0_81 = arith.constant 0 : index
    %c0_82 = arith.constant 0 : index
    %c0_83 = arith.constant 0 : index
    %142 = vector.load %arg2[%c0_81, %c0_82, %c0_83] : memref<1x128x128xbf16, #tpu.memory_space<vmem>>, vector<1x128x128xbf16>
    %143 = vector.shape_cast %142 : vector<1x128x128xbf16> to vector<128x128xbf16>
    %cst_84 = arith.constant dense<0.000000e+00> : vector<1x128xf32>
    %144 = tpu.matmul %141, %143, %cst_84 {dimension_numbers = #tpu.dot_dimension_numbers<[1], [0], [0], [1], [0, 0, 1, 1], [], []>} : vector<1x128xbf16>, vector<128x128xbf16>, vector<1x128xf32> -> vector<1x128xf32>
    %c1_85 = arith.constant 1 : index
    %c0_86 = arith.constant 0 : index
    %c0_87 = arith.constant 0 : index
    %145 = vector.load %arg4[%c1_85, %c0_86, %c0_87] : memref<2x1x128xf32, #tpu.memory_space<vmem>>, vector<1x1x128xf32>
    %146 = vector.shape_cast %145 : vector<1x1x128xf32> to vector<1x128xf32>
    %147 = arith.addf %144, %146 : vector<1x128xf32>
    %148 = arith.truncf %116 : vector<1x128xf32> to vector<1x128xbf16>
    %c1_88 = arith.constant 1 : index
    %c0_89 = arith.constant 0 : index
    %c0_90 = arith.constant 0 : index
    %149 = vector.load %arg3[%c1_88, %c0_89, %c0_90] : memref<2x128x128xbf16, #tpu.memory_space<vmem>>, vector<1x128x128xbf16>
    %150 = vector.shape_cast %149 : vector<1x128x128xbf16> to vector<128x128xbf16>
    %cst_91 = arith.constant dense<0.000000e+00> : vector<1x128xf32>
    %151 = tpu.matmul %148, %150, %cst_91 {dimension_numbers = #tpu.dot_dimension_numbers<[1], [0], [0], [1], [0, 0, 1, 1], [], []>} : vector<1x128xbf16>, vector<128x128xbf16>, vector<1x128xf32> -> vector<1x128xf32>
    %152 = arith.addf %147, %151 : vector<1x128xf32>
    %153 = arith.negf %152 : vector<1x128xf32>
    %154 = math.exp %153 : vector<1x128xf32>
    %cst_92 = arith.constant 1.000000e+00 : f32
    %155 = vector.broadcast %cst_92 : f32 to vector<1x128xf32>
    %156 = arith.addf %155, %154 : vector<1x128xf32>
    %157 = arith.divf %155, %156 : vector<1x128xf32>
    %cst_93 = arith.constant 2.000000e+00 : f32
    %158 = vector.broadcast %cst_93 : f32 to vector<1x128xf32>
    %159 = arith.mulf %158, %157 : vector<1x128xf32>
    %cst_94 = arith.constant 1.000000e+00 : f32
    %160 = vector.broadcast %cst_94 : f32 to vector<1x128xf32>
    %161 = arith.subf %159, %160 : vector<1x128xf32>
    %c96_i32_95 = arith.constant 96 : i32
    %162 = tpu.dynamic_rotate %157 by %c96_i32_95 dim 1 : vector<1x128xf32>, i32 -> vector<1x128xf32>
    %c64_i32_96 = arith.constant 64 : i32
    %163 = tpu.dynamic_rotate %161 by %c64_i32_96 dim 1 : vector<1x128xf32>, i32 -> vector<1x128xf32>
    %c32_i32_97 = arith.constant 32 : i32
    %164 = tpu.dynamic_rotate %157 by %c32_i32_97 dim 1 : vector<1x128xf32>, i32 -> vector<1x128xf32>
    %165 = arith.mulf %162, %114 : vector<1x128xf32>
    %166 = arith.mulf %157, %163 : vector<1x128xf32>
    %167 = arith.addf %165, %166 : vector<1x128xf32>
    %168 = math.tanh %167 : vector<1x128xf32>
    %169 = arith.mulf %164, %168 : vector<1x128xf32>
    %c2_98 = arith.constant 2 : index
    %c0_99 = arith.constant 0 : index
    %170 = vector.load %arg5[%c2_98, %c0_99] : memref<8x128xf32, #tpu.memory_space<vmem>>, vector<1x128xf32>
    tpu.vector_store %arg5[%c2_98, %c0_99], %169 {strides = array<i32>} : memref<8x128xf32, #tpu.memory_space<vmem>>, vector<1x128xf32>,
    %c3 = arith.constant 3 : index
    %c0_100 = arith.constant 0 : index
    %171 = vector.load %arg6[%c3, %c0_100] : memref<8x128xf32, #tpu.memory_space<vmem>>, vector<1x128xf32>
    %172 = arith.truncf %140 : vector<1x128xf32> to vector<1x128xbf16>
    %c0_101 = arith.constant 0 : index
    %c0_102 = arith.constant 0 : index
    %c0_103 = arith.constant 0 : index
    %173 = vector.load %arg3[%c0_101, %c0_102, %c0_103] : memref<2x128x128xbf16, #tpu.memory_space<vmem>>, vector<1x128x128xbf16>
    %174 = vector.shape_cast %173 : vector<1x128x128xbf16> to vector<128x128xbf16>
    %cst_104 = arith.constant dense<0.000000e+00> : vector<1x128xf32>
    %175 = tpu.matmul %172, %174, %cst_104 {dimension_numbers = #tpu.dot_dimension_numbers<[1], [0], [0], [1], [0, 0, 1, 1], [], []>} : vector<1x128xbf16>, vector<128x128xbf16>, vector<1x128xf32> -> vector<1x128xf32>
    %176 = arith.addf %171, %175 : vector<1x128xf32>
    %177 = arith.negf %176 : vector<1x128xf32>
    %178 = math.exp %177 : vector<1x128xf32>
    %cst_105 = arith.constant 1.000000e+00 : f32
    %179 = vector.broadcast %cst_105 : f32 to vector<1x128xf32>
    %180 = arith.addf %179, %178 : vector<1x128xf32>
    %181 = arith.divf %179, %180 : vector<1x128xf32>
    %cst_106 = arith.constant 2.000000e+00 : f32
    %182 = vector.broadcast %cst_106 : f32 to vector<1x128xf32>
    %183 = arith.mulf %182, %181 : vector<1x128xf32>
    %cst_107 = arith.constant 1.000000e+00 : f32
    %184 = vector.broadcast %cst_107 : f32 to vector<1x128xf32>
    %185 = arith.subf %183, %184 : vector<1x128xf32>
    %c96_i32_108 = arith.constant 96 : i32
    %186 = tpu.dynamic_rotate %181 by %c96_i32_108 dim 1 : vector<1x128xf32>, i32 -> vector<1x128xf32>
    %c64_i32_109 = arith.constant 64 : i32
    %187 = tpu.dynamic_rotate %185 by %c64_i32_109 dim 1 : vector<1x128xf32>, i32 -> vector<1x128xf32>
    %c32_i32_110 = arith.constant 32 : i32
    %188 = tpu.dynamic_rotate %181 by %c32_i32_110 dim 1 : vector<1x128xf32>, i32 -> vector<1x128xf32>
    %189 = arith.mulf %186, %138 : vector<1x128xf32>
    %190 = arith.mulf %181, %187 : vector<1x128xf32>
    %191 = arith.addf %189, %190 : vector<1x128xf32>
    %192 = math.tanh %191 : vector<1x128xf32>
    %193 = arith.mulf %188, %192 : vector<1x128xf32>
    %194 = arith.truncf %193 : vector<1x128xf32> to vector<1x128xbf16>
    %c0_111 = arith.constant 0 : index
    %c0_112 = arith.constant 0 : index
    %c0_113 = arith.constant 0 : index
    %195 = vector.load %arg2[%c0_111, %c0_112, %c0_113] : memref<1x128x128xbf16, #tpu.memory_space<vmem>>, vector<1x128x128xbf16>
    %196 = vector.shape_cast %195 : vector<1x128x128xbf16> to vector<128x128xbf16>
    %cst_114 = arith.constant dense<0.000000e+00> : vector<1x128xf32>
    %197 = tpu.matmul %194, %196, %cst_114 {dimension_numbers = #tpu.dot_dimension_numbers<[1], [0], [0], [1], [0, 0, 1, 1], [], []>} : vector<1x128xbf16>, vector<128x128xbf16>, vector<1x128xf32> -> vector<1x128xf32>
    %c1_115 = arith.constant 1 : index
    %c0_116 = arith.constant 0 : index
    %c0_117 = arith.constant 0 : index
    %198 = vector.load %arg4[%c1_115, %c0_116, %c0_117] : memref<2x1x128xf32, #tpu.memory_space<vmem>>, vector<1x1x128xf32>
    %199 = vector.shape_cast %198 : vector<1x1x128xf32> to vector<1x128xf32>
    %200 = arith.addf %197, %199 : vector<1x128xf32>
    %201 = arith.truncf %169 : vector<1x128xf32> to vector<1x128xbf16>
    %c1_118 = arith.constant 1 : index
    %c0_119 = arith.constant 0 : index
    %c0_120 = arith.constant 0 : index
    %202 = vector.load %arg3[%c1_118, %c0_119, %c0_120] : memref<2x128x128xbf16, #tpu.memory_space<vmem>>, vector<1x128x128xbf16>
    %203 = vector.shape_cast %202 : vector<1x128x128xbf16> to vector<128x128xbf16>
    %cst_121 = arith.constant dense<0.000000e+00> : vector<1x128xf32>
    %204 = tpu.matmul %201, %203, %cst_121 {dimension_numbers = #tpu.dot_dimension_numbers<[1], [0], [0], [1], [0, 0, 1, 1], [], []>} : vector<1x128xbf16>, vector<128x128xbf16>, vector<1x128xf32> -> vector<1x128xf32>
    %205 = arith.addf %200, %204 : vector<1x128xf32>
    %206 = arith.negf %205 : vector<1x128xf32>
    %207 = math.exp %206 : vector<1x128xf32>
    %cst_122 = arith.constant 1.000000e+00 : f32
    %208 = vector.broadcast %cst_122 : f32 to vector<1x128xf32>
    %209 = arith.addf %208, %207 : vector<1x128xf32>
    %210 = arith.divf %208, %209 : vector<1x128xf32>
    %cst_123 = arith.constant 2.000000e+00 : f32
    %211 = vector.broadcast %cst_123 : f32 to vector<1x128xf32>
    %212 = arith.mulf %211, %210 : vector<1x128xf32>
    %cst_124 = arith.constant 1.000000e+00 : f32
    %213 = vector.broadcast %cst_124 : f32 to vector<1x128xf32>
    %214 = arith.subf %212, %213 : vector<1x128xf32>
    %c96_i32_125 = arith.constant 96 : i32
    %215 = tpu.dynamic_rotate %210 by %c96_i32_125 dim 1 : vector<1x128xf32>, i32 -> vector<1x128xf32>
    %c64_i32_126 = arith.constant 64 : i32
    %216 = tpu.dynamic_rotate %214 by %c64_i32_126 dim 1 : vector<1x128xf32>, i32 -> vector<1x128xf32>
    %c32_i32_127 = arith.constant 32 : i32
    %217 = tpu.dynamic_rotate %210 by %c32_i32_127 dim 1 : vector<1x128xf32>, i32 -> vector<1x128xf32>
    %218 = arith.mulf %215, %167 : vector<1x128xf32>
    %219 = arith.mulf %210, %216 : vector<1x128xf32>
    %220 = arith.addf %218, %219 : vector<1x128xf32>
    %221 = math.tanh %220 : vector<1x128xf32>
    %222 = arith.mulf %217, %221 : vector<1x128xf32>
    %c3_128 = arith.constant 3 : index
    %c0_129 = arith.constant 0 : index
    %223 = vector.load %arg5[%c3_128, %c0_129] : memref<8x128xf32, #tpu.memory_space<vmem>>, vector<1x128xf32>
    tpu.vector_store %arg5[%c3_128, %c0_129], %222 {strides = array<i32>} : memref<8x128xf32, #tpu.memory_space<vmem>>, vector<1x128xf32>,
    %c4 = arith.constant 4 : index
    %c0_130 = arith.constant 0 : index
    %224 = vector.load %arg6[%c4, %c0_130] : memref<8x128xf32, #tpu.memory_space<vmem>>, vector<1x128xf32>
    %225 = arith.truncf %193 : vector<1x128xf32> to vector<1x128xbf16>
    %c0_131 = arith.constant 0 : index
    %c0_132 = arith.constant 0 : index
    %c0_133 = arith.constant 0 : index
    %226 = vector.load %arg3[%c0_131, %c0_132, %c0_133] : memref<2x128x128xbf16, #tpu.memory_space<vmem>>, vector<1x128x128xbf16>
    %227 = vector.shape_cast %226 : vector<1x128x128xbf16> to vector<128x128xbf16>
    %cst_134 = arith.constant dense<0.000000e+00> : vector<1x128xf32>
    %228 = tpu.matmul %225, %227, %cst_134 {dimension_numbers = #tpu.dot_dimension_numbers<[1], [0], [0], [1], [0, 0, 1, 1], [], []>} : vector<1x128xbf16>, vector<128x128xbf16>, vector<1x128xf32> -> vector<1x128xf32>
    %229 = arith.addf %224, %228 : vector<1x128xf32>
    %230 = arith.negf %229 : vector<1x128xf32>
    %231 = math.exp %230 : vector<1x128xf32>
    %cst_135 = arith.constant 1.000000e+00 : f32
    %232 = vector.broadcast %cst_135 : f32 to vector<1x128xf32>
    %233 = arith.addf %232, %231 : vector<1x128xf32>
    %234 = arith.divf %232, %233 : vector<1x128xf32>
    %cst_136 = arith.constant 2.000000e+00 : f32
    %235 = vector.broadcast %cst_136 : f32 to vector<1x128xf32>
    %236 = arith.mulf %235, %234 : vector<1x128xf32>
    %cst_137 = arith.constant 1.000000e+00 : f32
    %237 = vector.broadcast %cst_137 : f32 to vector<1x128xf32>
    %238 = arith.subf %236, %237 : vector<1x128xf32>
    %c96_i32_138 = arith.constant 96 : i32
    %239 = tpu.dynamic_rotate %234 by %c96_i32_138 dim 1 : vector<1x128xf32>, i32 -> vector<1x128xf32>
    %c64_i32_139 = arith.constant 64 : i32
    %240 = tpu.dynamic_rotate %238 by %c64_i32_139 dim 1 : vector<1x128xf32>, i32 -> vector<1x128xf32>
    %c32_i32_140 = arith.constant 32 : i32
    %241 = tpu.dynamic_rotate %234 by %c32_i32_140 dim 1 : vector<1x128xf32>, i32 -> vector<1x128xf32>
    %242 = arith.mulf %239, %191 : vector<1x128xf32>
    %243 = arith.mulf %234, %240 : vector<1x128xf32>
    %244 = arith.addf %242, %243 : vector<1x128xf32>
    %245 = math.tanh %244 : vector<1x128xf32>
    %246 = arith.mulf %241, %245 : vector<1x128xf32>
    %247 = arith.truncf %246 : vector<1x128xf32> to vector<1x128xbf16>
    %c0_141 = arith.constant 0 : index
    %c0_142 = arith.constant 0 : index
    %c0_143 = arith.constant 0 : index
    %248 = vector.load %arg2[%c0_141, %c0_142, %c0_143] : memref<1x128x128xbf16, #tpu.memory_space<vmem>>, vector<1x128x128xbf16>
    %249 = vector.shape_cast %248 : vector<1x128x128xbf16> to vector<128x128xbf16>
    %cst_144 = arith.constant dense<0.000000e+00> : vector<1x128xf32>
    %250 = tpu.matmul %247, %249, %cst_144 {dimension_numbers = #tpu.dot_dimension_numbers<[1], [0], [0], [1], [0, 0, 1, 1], [], []>} : vector<1x128xbf16>, vector<128x128xbf16>, vector<1x128xf32> -> vector<1x128xf32>
    %c1_145 = arith.constant 1 : index
    %c0_146 = arith.constant 0 : index
    %c0_147 = arith.constant 0 : index
    %251 = vector.load %arg4[%c1_145, %c0_146, %c0_147] : memref<2x1x128xf32, #tpu.memory_space<vmem>>, vector<1x1x128xf32>
    %252 = vector.shape_cast %251 : vector<1x1x128xf32> to vector<1x128xf32>
    %253 = arith.addf %250, %252 : vector<1x128xf32>
    %254 = arith.truncf %222 : vector<1x128xf32> to vector<1x128xbf16>
    %c1_148 = arith.constant 1 : index
    %c0_149 = arith.constant 0 : index
    %c0_150 = arith.constant 0 : index
    %255 = vector.load %arg3[%c1_148, %c0_149, %c0_150] : memref<2x128x128xbf16, #tpu.memory_space<vmem>>, vector<1x128x128xbf16>
    %256 = vector.shape_cast %255 : vector<1x128x128xbf16> to vector<128x128xbf16>
    %cst_151 = arith.constant dense<0.000000e+00> : vector<1x128xf32>
    %257 = tpu.matmul %254, %256, %cst_151 {dimension_numbers = #tpu.dot_dimension_numbers<[1], [0], [0], [1], [0, 0, 1, 1], [], []>} : vector<1x128xbf16>, vector<128x128xbf16>, vector<1x128xf32> -> vector<1x128xf32>
    %258 = arith.addf %253, %257 : vector<1x128xf32>
    %259 = arith.negf %258 : vector<1x128xf32>
    %260 = math.exp %259 : vector<1x128xf32>
    %cst_152 = arith.constant 1.000000e+00 : f32
    %261 = vector.broadcast %cst_152 : f32 to vector<1x128xf32>
    %262 = arith.addf %261, %260 : vector<1x128xf32>
    %263 = arith.divf %261, %262 : vector<1x128xf32>
    %cst_153 = arith.constant 2.000000e+00 : f32
    %264 = vector.broadcast %cst_153 : f32 to vector<1x128xf32>
    %265 = arith.mulf %264, %263 : vector<1x128xf32>
    %cst_154 = arith.constant 1.000000e+00 : f32
    %266 = vector.broadcast %cst_154 : f32 to vector<1x128xf32>
    %267 = arith.subf %265, %266 : vector<1x128xf32>
    %c96_i32_155 = arith.constant 96 : i32
    %268 = tpu.dynamic_rotate %263 by %c96_i32_155 dim 1 : vector<1x128xf32>, i32 -> vector<1x128xf32>
    %c64_i32_156 = arith.constant 64 : i32
    %269 = tpu.dynamic_rotate %267 by %c64_i32_156 dim 1 : vector<1x128xf32>, i32 -> vector<1x128xf32>
    %c32_i32_157 = arith.constant 32 : i32
    %270 = tpu.dynamic_rotate %263 by %c32_i32_157 dim 1 : vector<1x128xf32>, i32 -> vector<1x128xf32>
    %271 = arith.mulf %268, %220 : vector<1x128xf32>
    %272 = arith.mulf %263, %269 : vector<1x128xf32>
    %273 = arith.addf %271, %272 : vector<1x128xf32>
    %274 = math.tanh %273 : vector<1x128xf32>
    %275 = arith.mulf %270, %274 : vector<1x128xf32>
    %c4_158 = arith.constant 4 : index
    %c0_159 = arith.constant 0 : index
    %276 = vector.load %arg5[%c4_158, %c0_159] : memref<8x128xf32, #tpu.memory_space<vmem>>, vector<1x128xf32>
    tpu.vector_store %arg5[%c4_158, %c0_159], %275 {strides = array<i32>} : memref<8x128xf32, #tpu.memory_space<vmem>>, vector<1x128xf32>,
    %c5 = arith.constant 5 : index
    %c0_160 = arith.constant 0 : index
    %277 = vector.load %arg6[%c5, %c0_160] : memref<8x128xf32, #tpu.memory_space<vmem>>, vector<1x128xf32>
    %278 = arith.truncf %246 : vector<1x128xf32> to vector<1x128xbf16>
    %c0_161 = arith.constant 0 : index
    %c0_162 = arith.constant 0 : index
    %c0_163 = arith.constant 0 : index
    %279 = vector.load %arg3[%c0_161, %c0_162, %c0_163] : memref<2x128x128xbf16, #tpu.memory_space<vmem>>, vector<1x128x128xbf16>
    %280 = vector.shape_cast %279 : vector<1x128x128xbf16> to vector<128x128xbf16>
    %cst_164 = arith.constant dense<0.000000e+00> : vector<1x128xf32>
    %281 = tpu.matmul %278, %280, %cst_164 {dimension_numbers = #tpu.dot_dimension_numbers<[1], [0], [0], [1], [0, 0, 1, 1], [], []>} : vector<1x128xbf16>, vector<128x128xbf16>, vector<1x128xf32> -> vector<1x128xf32>
    %282 = arith.addf %277, %281 : vector<1x128xf32>
    %283 = arith.negf %282 : vector<1x128xf32>
    %284 = math.exp %283 : vector<1x128xf32>
    %cst_165 = arith.constant 1.000000e+00 : f32
    %285 = vector.broadcast %cst_165 : f32 to vector<1x128xf32>
    %286 = arith.addf %285, %284 : vector<1x128xf32>
    %287 = arith.divf %285, %286 : vector<1x128xf32>
    %cst_166 = arith.constant 2.000000e+00 : f32
    %288 = vector.broadcast %cst_166 : f32 to vector<1x128xf32>
    %289 = arith.mulf %288, %287 : vector<1x128xf32>
    %cst_167 = arith.constant 1.000000e+00 : f32
    %290 = vector.broadcast %cst_167 : f32 to vector<1x128xf32>
    %291 = arith.subf %289, %290 : vector<1x128xf32>
    %c96_i32_168 = arith.constant 96 : i32
    %292 = tpu.dynamic_rotate %287 by %c96_i32_168 dim 1 : vector<1x128xf32>, i32 -> vector<1x128xf32>
    %c64_i32_169 = arith.constant 64 : i32
    %293 = tpu.dynamic_rotate %291 by %c64_i32_169 dim 1 : vector<1x128xf32>, i32 -> vector<1x128xf32>
    %c32_i32_170 = arith.constant 32 : i32
    %294 = tpu.dynamic_rotate %287 by %c32_i32_170 dim 1 : vector<1x128xf32>, i32 -> vector<1x128xf32>
    %295 = arith.mulf %292, %244 : vector<1x128xf32>
    %296 = arith.mulf %287, %293 : vector<1x128xf32>
    %297 = arith.addf %295, %296 : vector<1x128xf32>
    %298 = math.tanh %297 : vector<1x128xf32>
    %299 = arith.mulf %294, %298 : vector<1x128xf32>
    %300 = arith.truncf %299 : vector<1x128xf32> to vector<1x128xbf16>
    %c0_171 = arith.constant 0 : index
    %c0_172 = arith.constant 0 : index
    %c0_173 = arith.constant 0 : index
    %301 = vector.load %arg2[%c0_171, %c0_172, %c0_173] : memref<1x128x128xbf16, #tpu.memory_space<vmem>>, vector<1x128x128xbf16>
    %302 = vector.shape_cast %301 : vector<1x128x128xbf16> to vector<128x128xbf16>
    %cst_174 = arith.constant dense<0.000000e+00> : vector<1x128xf32>
    %303 = tpu.matmul %300, %302, %cst_174 {dimension_numbers = #tpu.dot_dimension_numbers<[1], [0], [0], [1], [0, 0, 1, 1], [], []>} : vector<1x128xbf16>, vector<128x128xbf16>, vector<1x128xf32> -> vector<1x128xf32>
    %c1_175 = arith.constant 1 : index
    %c0_176 = arith.constant 0 : index
    %c0_177 = arith.constant 0 : index
    %304 = vector.load %arg4[%c1_175, %c0_176, %c0_177] : memref<2x1x128xf32, #tpu.memory_space<vmem>>, vector<1x1x128xf32>
    %305 = vector.shape_cast %304 : vector<1x1x128xf32> to vector<1x128xf32>
    %306 = arith.addf %303, %305 : vector<1x128xf32>
    %307 = arith.truncf %275 : vector<1x128xf32> to vector<1x128xbf16>
    %c1_178 = arith.constant 1 : index
    %c0_179 = arith.constant 0 : index
    %c0_180 = arith.constant 0 : index
    %308 = vector.load %arg3[%c1_178, %c0_179, %c0_180] : memref<2x128x128xbf16, #tpu.memory_space<vmem>>, vector<1x128x128xbf16>
    %309 = vector.shape_cast %308 : vector<1x128x128xbf16> to vector<128x128xbf16>
    %cst_181 = arith.constant dense<0.000000e+00> : vector<1x128xf32>
    %310 = tpu.matmul %307, %309, %cst_181 {dimension_numbers = #tpu.dot_dimension_numbers<[1], [0], [0], [1], [0, 0, 1, 1], [], []>} : vector<1x128xbf16>, vector<128x128xbf16>, vector<1x128xf32> -> vector<1x128xf32>
    %311 = arith.addf %306, %310 : vector<1x128xf32>
    %312 = arith.negf %311 : vector<1x128xf32>
    %313 = math.exp %312 : vector<1x128xf32>
    %cst_182 = arith.constant 1.000000e+00 : f32
    %314 = vector.broadcast %cst_182 : f32 to vector<1x128xf32>
    %315 = arith.addf %314, %313 : vector<1x128xf32>
    %316 = arith.divf %314, %315 : vector<1x128xf32>
    %cst_183 = arith.constant 2.000000e+00 : f32
    %317 = vector.broadcast %cst_183 : f32 to vector<1x128xf32>
    %318 = arith.mulf %317, %316 : vector<1x128xf32>
    %cst_184 = arith.constant 1.000000e+00 : f32
    %319 = vector.broadcast %cst_184 : f32 to vector<1x128xf32>
    %320 = arith.subf %318, %319 : vector<1x128xf32>
    %c96_i32_185 = arith.constant 96 : i32
    %321 = tpu.dynamic_rotate %316 by %c96_i32_185 dim 1 : vector<1x128xf32>, i32 -> vector<1x128xf32>
    %c64_i32_186 = arith.constant 64 : i32
    %322 = tpu.dynamic_rotate %320 by %c64_i32_186 dim 1 : vector<1x128xf32>, i32 -> vector<1x128xf32>
    %c32_i32_187 = arith.constant 32 : i32
    %323 = tpu.dynamic_rotate %316 by %c32_i32_187 dim 1 : vector<1x128xf32>, i32 -> vector<1x128xf32>
    %324 = arith.mulf %321, %273 : vector<1x128xf32>
    %325 = arith.mulf %316, %322 : vector<1x128xf32>
    %326 = arith.addf %324, %325 : vector<1x128xf32>
    %327 = math.tanh %326 : vector<1x128xf32>
    %328 = arith.mulf %323, %327 : vector<1x128xf32>
    %c5_188 = arith.constant 5 : index
    %c0_189 = arith.constant 0 : index
    %329 = vector.load %arg5[%c5_188, %c0_189] : memref<8x128xf32, #tpu.memory_space<vmem>>, vector<1x128xf32>
    tpu.vector_store %arg5[%c5_188, %c0_189], %328 {strides = array<i32>} : memref<8x128xf32, #tpu.memory_space<vmem>>, vector<1x128xf32>,
    %c6 = arith.constant 6 : index
    %c0_190 = arith.constant 0 : index
    %330 = vector.load %arg6[%c6, %c0_190] : memref<8x128xf32, #tpu.memory_space<vmem>>, vector<1x128xf32>
    %331 = arith.truncf %299 : vector<1x128xf32> to vector<1x128xbf16>
    %c0_191 = arith.constant 0 : index
    %c0_192 = arith.constant 0 : index
    %c0_193 = arith.constant 0 : index
    %332 = vector.load %arg3[%c0_191, %c0_192, %c0_193] : memref<2x128x128xbf16, #tpu.memory_space<vmem>>, vector<1x128x128xbf16>
    %333 = vector.shape_cast %332 : vector<1x128x128xbf16> to vector<128x128xbf16>
    %cst_194 = arith.constant dense<0.000000e+00> : vector<1x128xf32>
    %334 = tpu.matmul %331, %333, %cst_194 {dimension_numbers = #tpu.dot_dimension_numbers<[1], [0], [0], [1], [0, 0, 1, 1], [], []>} : vector<1x128xbf16>, vector<128x128xbf16>, vector<1x128xf32> -> vector<1x128xf32>
    %335 = arith.addf %330, %334 : vector<1x128xf32>
    %336 = arith.negf %335 : vector<1x128xf32>
    %337 = math.exp %336 : vector<1x128xf32>
    %cst_195 = arith.constant 1.000000e+00 : f32
    %338 = vector.broadcast %cst_195 : f32 to vector<1x128xf32>
    %339 = arith.addf %338, %337 : vector<1x128xf32>
    %340 = arith.divf %338, %339 : vector<1x128xf32>
    %cst_196 = arith.constant 2.000000e+00 : f32
    %341 = vector.broadcast %cst_196 : f32 to vector<1x128xf32>
    %342 = arith.mulf %341, %340 : vector<1x128xf32>
    %cst_197 = arith.constant 1.000000e+00 : f32
    %343 = vector.broadcast %cst_197 : f32 to vector<1x128xf32>
    %344 = arith.subf %342, %343 : vector<1x128xf32>
    %c96_i32_198 = arith.constant 96 : i32
    %345 = tpu.dynamic_rotate %340 by %c96_i32_198 dim 1 : vector<1x128xf32>, i32 -> vector<1x128xf32>
    %c64_i32_199 = arith.constant 64 : i32
    %346 = tpu.dynamic_rotate %344 by %c64_i32_199 dim 1 : vector<1x128xf32>, i32 -> vector<1x128xf32>
    %c32_i32_200 = arith.constant 32 : i32
    %347 = tpu.dynamic_rotate %340 by %c32_i32_200 dim 1 : vector<1x128xf32>, i32 -> vector<1x128xf32>
    %348 = arith.mulf %345, %297 : vector<1x128xf32>
    %349 = arith.mulf %340, %346 : vector<1x128xf32>
    %350 = arith.addf %348, %349 : vector<1x128xf32>
    %351 = math.tanh %350 : vector<1x128xf32>
    %352 = arith.mulf %347, %351 : vector<1x128xf32>
    %353 = arith.truncf %352 : vector<1x128xf32> to vector<1x128xbf16>
    %c0_201 = arith.constant 0 : index
    %c0_202 = arith.constant 0 : index
    %c0_203 = arith.constant 0 : index
    %354 = vector.load %arg2[%c0_201, %c0_202, %c0_203] : memref<1x128x128xbf16, #tpu.memory_space<vmem>>, vector<1x128x128xbf16>
    %355 = vector.shape_cast %354 : vector<1x128x128xbf16> to vector<128x128xbf16>
    %cst_204 = arith.constant dense<0.000000e+00> : vector<1x128xf32>
    %356 = tpu.matmul %353, %355, %cst_204 {dimension_numbers = #tpu.dot_dimension_numbers<[1], [0], [0], [1], [0, 0, 1, 1], [], []>} : vector<1x128xbf16>, vector<128x128xbf16>, vector<1x128xf32> -> vector<1x128xf32>
    %c1_205 = arith.constant 1 : index
    %c0_206 = arith.constant 0 : index
    %c0_207 = arith.constant 0 : index
    %357 = vector.load %arg4[%c1_205, %c0_206, %c0_207] : memref<2x1x128xf32, #tpu.memory_space<vmem>>, vector<1x1x128xf32>
    %358 = vector.shape_cast %357 : vector<1x1x128xf32> to vector<1x128xf32>
    %359 = arith.addf %356, %358 : vector<1x128xf32>
    %360 = arith.truncf %328 : vector<1x128xf32> to vector<1x128xbf16>
    %c1_208 = arith.constant 1 : index
    %c0_209 = arith.constant 0 : index
    %c0_210 = arith.constant 0 : index
    %361 = vector.load %arg3[%c1_208, %c0_209, %c0_210] : memref<2x128x128xbf16, #tpu.memory_space<vmem>>, vector<1x128x128xbf16>
    %362 = vector.shape_cast %361 : vector<1x128x128xbf16> to vector<128x128xbf16>
    %cst_211 = arith.constant dense<0.000000e+00> : vector<1x128xf32>
    %363 = tpu.matmul %360, %362, %cst_211 {dimension_numbers = #tpu.dot_dimension_numbers<[1], [0], [0], [1], [0, 0, 1, 1], [], []>} : vector<1x128xbf16>, vector<128x128xbf16>, vector<1x128xf32> -> vector<1x128xf32>
    %364 = arith.addf %359, %363 : vector<1x128xf32>
    %365 = arith.negf %364 : vector<1x128xf32>
    %366 = math.exp %365 : vector<1x128xf32>
    %cst_212 = arith.constant 1.000000e+00 : f32
    %367 = vector.broadcast %cst_212 : f32 to vector<1x128xf32>
    %368 = arith.addf %367, %366 : vector<1x128xf32>
    %369 = arith.divf %367, %368 : vector<1x128xf32>
    %cst_213 = arith.constant 2.000000e+00 : f32
    %370 = vector.broadcast %cst_213 : f32 to vector<1x128xf32>
    %371 = arith.mulf %370, %369 : vector<1x128xf32>
    %cst_214 = arith.constant 1.000000e+00 : f32
    %372 = vector.broadcast %cst_214 : f32 to vector<1x128xf32>
    %373 = arith.subf %371, %372 : vector<1x128xf32>
    %c96_i32_215 = arith.constant 96 : i32
    %374 = tpu.dynamic_rotate %369 by %c96_i32_215 dim 1 : vector<1x128xf32>, i32 -> vector<1x128xf32>
    %c64_i32_216 = arith.constant 64 : i32
    %375 = tpu.dynamic_rotate %373 by %c64_i32_216 dim 1 : vector<1x128xf32>, i32 -> vector<1x128xf32>
    %c32_i32_217 = arith.constant 32 : i32
    %376 = tpu.dynamic_rotate %369 by %c32_i32_217 dim 1 : vector<1x128xf32>, i32 -> vector<1x128xf32>
    %377 = arith.mulf %374, %326 : vector<1x128xf32>
    %378 = arith.mulf %369, %375 : vector<1x128xf32>
    %379 = arith.addf %377, %378 : vector<1x128xf32>
    %380 = math.tanh %379 : vector<1x128xf32>
    %381 = arith.mulf %376, %380 : vector<1x128xf32>
    %c6_218 = arith.constant 6 : index
    %c0_219 = arith.constant 0 : index
    %382 = vector.load %arg5[%c6_218, %c0_219] : memref<8x128xf32, #tpu.memory_space<vmem>>, vector<1x128xf32>
    tpu.vector_store %arg5[%c6_218, %c0_219], %381 {strides = array<i32>} : memref<8x128xf32, #tpu.memory_space<vmem>>, vector<1x128xf32>,
    %c7 = arith.constant 7 : index
    %c0_220 = arith.constant 0 : index
    %383 = vector.load %arg6[%c7, %c0_220] : memref<8x128xf32, #tpu.memory_space<vmem>>, vector<1x128xf32>
    %384 = arith.truncf %352 : vector<1x128xf32> to vector<1x128xbf16>
    %c0_221 = arith.constant 0 : index
    %c0_222 = arith.constant 0 : index
    %c0_223 = arith.constant 0 : index
    %385 = vector.load %arg3[%c0_221, %c0_222, %c0_223] : memref<2x128x128xbf16, #tpu.memory_space<vmem>>, vector<1x128x128xbf16>
    %386 = vector.shape_cast %385 : vector<1x128x128xbf16> to vector<128x128xbf16>
    %cst_224 = arith.constant dense<0.000000e+00> : vector<1x128xf32>
    %387 = tpu.matmul %384, %386, %cst_224 {dimension_numbers = #tpu.dot_dimension_numbers<[1], [0], [0], [1], [0, 0, 1, 1], [], []>} : vector<1x128xbf16>, vector<128x128xbf16>, vector<1x128xf32> -> vector<1x128xf32>
    %388 = arith.addf %383, %387 : vector<1x128xf32>
    %389 = arith.negf %388 : vector<1x128xf32>
    %390 = math.exp %389 : vector<1x128xf32>
    %cst_225 = arith.constant 1.000000e+00 : f32
    %391 = vector.broadcast %cst_225 : f32 to vector<1x128xf32>
    %392 = arith.addf %391, %390 : vector<1x128xf32>
    %393 = arith.divf %391, %392 : vector<1x128xf32>
    %cst_226 = arith.constant 2.000000e+00 : f32
    %394 = vector.broadcast %cst_226 : f32 to vector<1x128xf32>
    %395 = arith.mulf %394, %393 : vector<1x128xf32>
    %cst_227 = arith.constant 1.000000e+00 : f32
    %396 = vector.broadcast %cst_227 : f32 to vector<1x128xf32>
    %397 = arith.subf %395, %396 : vector<1x128xf32>
    %c96_i32_228 = arith.constant 96 : i32
    %398 = tpu.dynamic_rotate %393 by %c96_i32_228 dim 1 : vector<1x128xf32>, i32 -> vector<1x128xf32>
    %c64_i32_229 = arith.constant 64 : i32
    %399 = tpu.dynamic_rotate %397 by %c64_i32_229 dim 1 : vector<1x128xf32>, i32 -> vector<1x128xf32>
    %c32_i32_230 = arith.constant 32 : i32
    %400 = tpu.dynamic_rotate %393 by %c32_i32_230 dim 1 : vector<1x128xf32>, i32 -> vector<1x128xf32>
    %401 = arith.mulf %398, %350 : vector<1x128xf32>
    %402 = arith.mulf %393, %399 : vector<1x128xf32>
    %403 = arith.addf %401, %402 : vector<1x128xf32>
    %404 = math.tanh %403 : vector<1x128xf32>
    %405 = arith.mulf %400, %404 : vector<1x128xf32>
    %406 = arith.truncf %405 : vector<1x128xf32> to vector<1x128xbf16>
    %c0_231 = arith.constant 0 : index
    %c0_232 = arith.constant 0 : index
    %c0_233 = arith.constant 0 : index
    %407 = vector.load %arg2[%c0_231, %c0_232, %c0_233] : memref<1x128x128xbf16, #tpu.memory_space<vmem>>, vector<1x128x128xbf16>
    %408 = vector.shape_cast %407 : vector<1x128x128xbf16> to vector<128x128xbf16>
    %cst_234 = arith.constant dense<0.000000e+00> : vector<1x128xf32>
    %409 = tpu.matmul %406, %408, %cst_234 {dimension_numbers = #tpu.dot_dimension_numbers<[1], [0], [0], [1], [0, 0, 1, 1], [], []>} : vector<1x128xbf16>, vector<128x128xbf16>, vector<1x128xf32> -> vector<1x128xf32>
    %c1_235 = arith.constant 1 : index
    %c0_236 = arith.constant 0 : index
    %c0_237 = arith.constant 0 : index
    %410 = vector.load %arg4[%c1_235, %c0_236, %c0_237] : memref<2x1x128xf32, #tpu.memory_space<vmem>>, vector<1x1x128xf32>
    %411 = vector.shape_cast %410 : vector<1x1x128xf32> to vector<1x128xf32>
    %412 = arith.addf %409, %411 : vector<1x128xf32>
    %413 = arith.truncf %381 : vector<1x128xf32> to vector<1x128xbf16>
    %c1_238 = arith.constant 1 : index
    %c0_239 = arith.constant 0 : index
    %c0_240 = arith.constant 0 : index
    %414 = vector.load %arg3[%c1_238, %c0_239, %c0_240] : memref<2x128x128xbf16, #tpu.memory_space<vmem>>, vector<1x128x128xbf16>
    %415 = vector.shape_cast %414 : vector<1x128x128xbf16> to vector<128x128xbf16>
    %cst_241 = arith.constant dense<0.000000e+00> : vector<1x128xf32>
    %416 = tpu.matmul %413, %415, %cst_241 {dimension_numbers = #tpu.dot_dimension_numbers<[1], [0], [0], [1], [0, 0, 1, 1], [], []>} : vector<1x128xbf16>, vector<128x128xbf16>, vector<1x128xf32> -> vector<1x128xf32>
    %417 = arith.addf %412, %416 : vector<1x128xf32>
    %418 = arith.negf %417 : vector<1x128xf32>
    %419 = math.exp %418 : vector<1x128xf32>
    %cst_242 = arith.constant 1.000000e+00 : f32
    %420 = vector.broadcast %cst_242 : f32 to vector<1x128xf32>
    %421 = arith.addf %420, %419 : vector<1x128xf32>
    %422 = arith.divf %420, %421 : vector<1x128xf32>
    %cst_243 = arith.constant 2.000000e+00 : f32
    %423 = vector.broadcast %cst_243 : f32 to vector<1x128xf32>
    %424 = arith.mulf %423, %422 : vector<1x128xf32>
    %cst_244 = arith.constant 1.000000e+00 : f32
    %425 = vector.broadcast %cst_244 : f32 to vector<1x128xf32>
    %426 = arith.subf %424, %425 : vector<1x128xf32>
    %c96_i32_245 = arith.constant 96 : i32
    %427 = tpu.dynamic_rotate %422 by %c96_i32_245 dim 1 : vector<1x128xf32>, i32 -> vector<1x128xf32>
    %c64_i32_246 = arith.constant 64 : i32
    %428 = tpu.dynamic_rotate %426 by %c64_i32_246 dim 1 : vector<1x128xf32>, i32 -> vector<1x128xf32>
    %c32_i32_247 = arith.constant 32 : i32
    %429 = tpu.dynamic_rotate %422 by %c32_i32_247 dim 1 : vector<1x128xf32>, i32 -> vector<1x128xf32>
    %430 = arith.mulf %427, %379 : vector<1x128xf32>
    %431 = arith.mulf %422, %428 : vector<1x128xf32>
    %432 = arith.addf %430, %431 : vector<1x128xf32>
    %433 = math.tanh %432 : vector<1x128xf32>
    %434 = arith.mulf %429, %433 : vector<1x128xf32>
    %c7_248 = arith.constant 7 : index
    %c0_249 = arith.constant 0 : index
    %435 = vector.load %arg5[%c7_248, %c0_249] : memref<8x128xf32, #tpu.memory_space<vmem>>, vector<1x128xf32>
    tpu.vector_store %arg5[%c7_248, %c0_249], %434 {strides = array<i32>} : memref<8x128xf32, #tpu.memory_space<vmem>>, vector<1x128xf32>,
    return
  }
}

</mosaic_0001>

<bundles_post_ra>
// kernel: image_encoder_lstm_forward.1
= control target key start
LH: loop header
LB: loop body
LE: loop exit
PB: predicated region body
PF: predicated region fallthrough
CT: control target
= control target key end

     0   :  { %v4381_v1 = vmov 0.0   ;;  %vm4382_vm0 = vmmov 0   ;;  %vm38_vm1 = vcmask 130048   ;;  %v4383_v11 = vmov 0   ;;  %s5384_s0 = inlined_call_operand.vmem [shape: bf16[8,16], index: 0, kind: input, shape index: {}]   ;;  %s5385_s1 = inlined_call_operand.vmem [shape: bf16[16,128], index: 1, kind: input, shape index: {}]   ;;  %s5386_s2 = inlined_call_operand.vmem [shape: bf16[1,128,128], index: 2, kind: input, shape index: {}]   ;;  %s5387_s3 = inlined_call_operand.vmem [shape: bf16[2,128,128], index: 3, kind: input, shape index: {}]   ;;  %s5388_s4 = inlined_call_operand.vmem [shape: f32[2,1,128], index: 4, kind: input, shape index: {}]   ;;  %s5389_s5 = inlined_call_operand.hbm [shape: f32[8,128], index: 5, kind: output, shape index: {}]  }
   0x1   :  { %v4068_v0 = vld [vmem:[%s5385_s1] sm:$0xff]   ;;  %3535 = vmatprep.subr.bf16.mxu0 %v4381_v1  ;;  %3601 = vmatprep.subr.bf16.mxu1 %v4381_v1  ;;  %v4070_v4 = vld [vmem:[%s5387_s3 + $0x8] sm:$0xff]   ;;  %v4071_v5 = vld [vmem:[%s5387_s3 + $0x10] sm:$0xff]  }
   0x2   :  { %v22_v2 = vld [vmem:[%s5384_s0] sm:$0xf]  ;;  %3536 = vmatpush3.bf16.msra.mxu0 %v4068_v0  ;;  %3537 = vmatprep.mubr.msk.bf16.mxu0 %vm4382_vm0, %v4381_v1  ;;  %v4072_v6 = vld [vmem:[%s5387_s3 + $0x18] sm:$0xff]   ;;  %v4074_v8 = vld [vmem:[%s5387_s3 + $0x28] sm:$0xff]  }
   0x3   :  { %v4069_v3 = vld [vmem:[%s5387_s3] sm:$0xff]   ;;  %3541 = vmatprep.subr.bf16.mxu0 %v4381_v1  ;;  %3617 = vmatprep.mubr.msk.bf16.mxu1 %vm4382_vm0, %v4381_v1  ;;  %v4075_v9 = vld [vmem:[%s5387_s3 + $0x30] sm:$0xff]   ;;  %v4076_v10 = vld [vmem:[%s5387_s3 + $0x38] sm:$0xff]  }
   0x4   :  { %v4073_v7 = vld [vmem:[%s5387_s3 + $0x20] sm:$0xff]  }
   0x5   :  { %3538 = vmatmul.mubr.msk.bf16.vlgmr.msra.gmra.mrb[0].mxu0 %vm38_vm1, %v22_v2 }
   0x6   :  { %3542 = vmatpush3.bf16.msra.mxu0 %v4069_v3  ;;  %3557 = vmatprep.mubr.msk.bf16.mxu0 %vm4382_vm0, %v4381_v1 }
   0x7   :  { %3543 = vmatprep.subr.bf16.mxu0 %v4381_v1 }
   0xa   :  { %3544 = vmatpush3.bf16.msra.mxu0 %v4070_v4 }
   0xb   :  { %3545 = vmatprep.subr.bf16.mxu0 %v4381_v1 }
   0xe   :  { %3546 = vmatpush3.bf16.msra.mxu0 %v4071_v5 }
   0xf   :  { %3547 = vmatprep.subr.bf16.mxu0 %v4381_v1 }
  0x12   :  { %3548 = vmatpush3.bf16.msra.mxu0 %v4072_v6 }
  0x13   :  { %3549 = vmatprep.subr.bf16.mxu0 %v4381_v1 }
  0x16   :  { %3550 = vmatpush3.bf16.msra.mxu0 %v4073_v7 }
  0x17   :  { %3551 = vmatprep.subr.bf16.mxu0 %v4381_v1 }
  0x1a   :  { %3552 = vmatpush3.bf16.msra.mxu0 %v4074_v8 }
  0x1b   :  { %3553 = vmatprep.subr.bf16.mxu0 %v4381_v1 }
  0x1e   :  { %3554 = vmatpush3.bf16.msra.mxu0 %v4075_v9 }
  0x1f   :  { %3555 = vmatprep.subr.bf16.mxu0 %v4381_v1 }
  0x22   :  { %3556 = vmatpush3.bf16.msra.mxu0 %v4076_v10 }
  0x23   :  { %3561 = vmatprep.subr.bf16.mxu0 %v4381_v1 }
  0x25   :  { %3558 = vmatmul.mubr.bf16.vlgmr.msra.gmra.mrb[4].mxu0 %v4383_v11 }
  0x26   :  { %3577 = vmatprep.mubr.msk.bf16.mxu0 %vm4382_vm0, %v4381_v1 }
  0x27   :  { %10 = vsyncpa [#allocation4], 0  ;;  %v4077_v12 = vld [vmem:[%s5386_s2] sm:$0xff]   ;;  %v4079_v14 = vld [vmem:[%s5386_s2 + $0x8] sm:$0xff]   ;;  %s4384_s14 = smov 32   ;;  %s4385_s15 = smov 96  }
  0x28   :  { %v4078_v13 = vld [vmem:[%s5387_s3] sm:$0xff]   ;;  %3562 = vmatpush3.bf16.msra.mxu0 %v4077_v12  ;;  %v4080_v15 = vld [vmem:[%s5387_s3 + $0x8] sm:$0xff]   ;;  %v4081_v16 = vld [vmem:[%s5386_s2 + $0x10] sm:$0xff]   ;;  %s4386_s20 = smov 64  }
  0x29   :  { %3602 = vmatpush3.bf16.msra.mxu1 %v4078_v13  ;;  %3563 = vmatprep.subr.bf16.mxu0 %v4381_v1  ;;  %v2954_v17 = vld [vmem:[%s5388_s4] ss:$0 sm:$0xff]  ;;  %v4082_v30 = vld [vmem:[%s5387_s3 + $0x10] sm:$0xff]   ;;  %v4083_v33 = vld [vmem:[%s5386_s2 + $0x18] sm:$0xff]  }
  0x2a   :  { %3603 = vmatprep.subr.bf16.mxu1 %v4381_v1  ;;  %v4084_v34 = vld [vmem:[%s5387_s3 + $0x18] sm:$0xff]   ;;  %v4085_v35 = vld [vmem:[%s5386_s2 + $0x20] sm:$0xff]   ;;  %v4087_v37 = vld [vmem:[%s5386_s2 + $0x28] sm:$0xff]  }
  0x2b   :  { %v4086_v36 = vld [vmem:[%s5387_s3 + $0x20] sm:$0xff]   ;;  %v4088_v38 = vld [vmem:[%s5387_s3 + $0x28] sm:$0xff]   ;;  %v4089_v39 = vld [vmem:[%s5386_s2 + $0x30] sm:$0xff]  }
  0x2c   :  { %3564 = vmatpush3.bf16.msra.mxu0 %v4079_v14  ;;  %v4090_v41 = vld [vmem:[%s5387_s3 + $0x30] sm:$0xff]   ;;  %v4091_v44 = vld [vmem:[%s5386_s2 + $0x38] sm:$0xff]   ;;  %v4093_v54 = vld [vmem:[%s5387_s3 + $0x40] sm:$0xff]  }
  0x2d   :  { %3604 = vmatpush3.bf16.msra.mxu1 %v4080_v15  ;;  %3565 = vmatprep.subr.bf16.mxu0 %v4381_v1  ;;  %v4092_v45 = vld [vmem:[%s5387_s3 + $0x38] sm:$0xff]   ;;  %v4094_v56 = vld [vmem:[%s5387_s3 + $0x48] sm:$0xff]   ;;  %v4095_v57 = vld [vmem:[%s5387_s3 + $0x50] sm:$0xff]  }
  0x2e   :  { %3605 = vmatprep.subr.bf16.mxu1 %v4381_v1  ;;  %v4096_v58 = vld [vmem:[%s5387_s3 + $0x58] sm:$0xff]   ;;  %v4097_v59 = vld [vmem:[%s5387_s3 + $0x60] sm:$0xff]   ;;  %v4098_v60 = vld [vmem:[%s5387_s3 + $0x68] sm:$0xff]  }
  0x2f   :  { %v4099_v61 = vld [vmem:[%s5387_s3 + $0x70] sm:$0xff]   ;;  %v4100_v62 = vld [vmem:[%s5387_s3 + $0x78] sm:$0xff]   ;;  %v4101_v63 = vld [vmem:[%s5386_s2] sm:$0xff]  }
  0x30   :  { %3566 = vmatpush3.bf16.msra.mxu0 %v4081_v16  ;;  %v4102_v0 = vld [vmem:[%s5387_s3] sm:$0xff]   ;;  %v4103_v2 = vld [vmem:[%s5386_s2 + $0x8] sm:$0xff]   ;;  %v4105_v4 = vld [vmem:[%s5386_s2 + $0x10] sm:$0xff]  }
  0x31   :  { %3567 = vmatprep.subr.bf16.mxu0 %v4381_v1  ;;  %3606 = vmatpush3.bf16.msra.mxu1 %v4082_v30  ;;  %v4104_v3 = vld [vmem:[%s5387_s3 + $0x8] sm:$0xff]   ;;  %v4106_v13 = vld [vmem:[%s5387_s3 + $0x10] sm:$0xff]   ;;  %v4107_v15 = vld [vmem:[%s5386_s2 + $0x18] sm:$0xff]  }
  0x32   :  { %3607 = vmatprep.subr.bf16.mxu1 %v4381_v1  ;;  %v4108_v16 = vld [vmem:[%s5387_s3 + $0x18] sm:$0xff]  }
  0x34   :  { %3568 = vmatpush3.bf16.msra.mxu0 %v4083_v33 }
  0x35   :  { %3569 = vmatprep.subr.bf16.mxu0 %v4381_v1  ;;  %3608 = vmatpush3.bf16.msra.mxu1 %v4084_v34 }
  0x36   :  { %3609 = vmatprep.subr.bf16.mxu1 %v4381_v1 }
  0x38   :  { %3570 = vmatpush3.bf16.msra.mxu0 %v4085_v35 }
  0x39   :  { %3610 = vmatpush3.bf16.msra.mxu1 %v4086_v36  ;;  %3571 = vmatprep.subr.bf16.mxu0 %v4381_v1 }
  0x3a   :  { %3611 = vmatprep.subr.bf16.mxu1 %v4381_v1 }
  0x3c   :  { %3572 = vmatpush3.bf16.msra.mxu0 %v4087_v37 }
  0x3d   :  { %3612 = vmatpush3.bf16.msra.mxu1 %v4088_v38  ;;  %3573 = vmatprep.subr.bf16.mxu0 %v4381_v1 }
  0x3e   :  { %3613 = vmatprep.subr.bf16.mxu1 %v4381_v1 }
  0x40   :  { %3574 = vmatpush3.bf16.msra.mxu0 %v4089_v39 }
  0x41   :  { %3614 = vmatpush3.bf16.msra.mxu1 %v4090_v41  ;;  %3575 = vmatprep.subr.bf16.mxu0 %v4381_v1 }
  0x42   :  { %3615 = vmatprep.subr.bf16.mxu1 %v4381_v1 }
  0x44   :  { %3576 = vmatpush3.bf16.msra.mxu0 %v4091_v44 }
  0x45   :  { %3616 = vmatpush3.bf16.msra.mxu1 %v4092_v45  ;;  %3581 = vmatprep.subr.bf16.mxu0 %v4381_v1 }
  0x46   :  { %3621 = vmatprep.subr.bf16.mxu1 %v4381_v1 }
  0xd8   :  { %v76_v18 = vpop.f32.mrb[0].mxu0 }
  0xd9   :  { %v77_v19 = vadd.f32 %v2954_v17, %v76_v18  ;;  %v3539_v20 = vpop.f32.mrb[1].mxu0  ;;  %v4109_v17 = vld [vmem:[%s5386_s2 + $0x20] sm:$0xff]  }
  0xda   :  { %v79_v21 = vpop.f32.mrb[2].mxu0  ;;  %v4110_v18 = vld [vmem:[%s5387_s3 + $0x20] sm:$0xff]   ;;  %v4112_v20 = vld [vmem:[%s5387_s3 + $0x28] sm:$0xff]  }
  0xdb   :  { %82 = vst [vmem:[#allocation2] sm:$0xff] %v77_v19  ;;  %v3540_v22 = vpop.f32.mrb[3].mxu0  ;;  %v4111_v19 = vld [vmem:[%s5386_s2 + $0x28] sm:$0xff]  }
  0xdc   :  { %v4113_v22 = vld [vmem:[%s5386_s2 + $0x30] sm:$0xff]  }
  0xe2   :  { %v83_v23 = vld [vmem:[#allocation2] sm:$0x1]  ;;  %v441_v5 = vld [vmem:[#allocation2 + $0x1] sm:$0x1] }
  0xf8   :  { %v182_v24 = vpop.f32.mrb[4].mxu0 }
  0xf9   :  { %v188_v25 = vadd.f32 %v182_v24, %v83_v23  ;;  %v3559_v26 = vpop.f32.mrb[5].mxu0  ;;  %v2967_v24 = vld [vmem:[%s5388_s4 + $0x1] sm:$0x1] }
  0xfa   :  { %v185_v27 = vpop.f32.mrb[6].mxu0 }
  0xfb   :  { %v2965_v28 = vmul.f32 -1.442695, %v188_v25  ;;  %v3560_v29 = vpop.f32.mrb[7].mxu0  ;;  %v4114_v25 = vld [vmem:[%s5387_s3 + $0x30] sm:$0xff]  }
  0xfd   :  { %4261 = vpow2.f32 %v2965_v28  ;;  %v4115_v28 = vld [vmem:[%s5386_s2 + $0x38] sm:$0xff]  }
 0x107   :  { %v4262_v31 = vpop.eup %4261 }
 0x108   :  { %v192_v32 = vadd.f32 1.0, %v4262_v31 }
 0x10a   :  { %4263 = vrcp.f32 %v192_v32  ;;  %v4116_v32 = vld [vmem:[%s5387_s3 + $0x38] sm:$0xff]  }
 0x114   :  { %v4264_v40 = vpop.eup %4263 }
 0x115   :  { %201 = vrot.lane.b32.xlu1 %v4264_v40, %s4384_s14  ;;  %197 = vrot.lane.b32.xlu0 %v4264_v40, %s4385_s15  ;;  %v195_v42 = vmul.f32 2.0, %v4264_v40 }
 0x117   :  { %v2966_v43 = vadd.f32 -1.0, %v195_v42 }
 0x119   :  { %199 = vrot.lane.b32.xlu0 %v2966_v43, %s4386_s20 }
 0x187   :  { %v198_v46 = vpop.permute.xlu0 %197  ;;  %v202_v52 = vpop.permute.xlu1 %201 }
 0x188   :  { %v203_v48 = vmul.f32 0.0, %v198_v46 }
 0x18b   :  { %v200_v47 = vpop.permute.xlu0 %199 }
 0x18c   :  { %v204_v49 = vmul.f32 %v4264_v40, %v200_v47 }
 0x18e   :  { %v4538_v50 = vadd.f32 %v204_v49, %v203_v48  ;;  %v4117_v48 = vld [vmem:[%s5387_s3 + $0x40] sm:$0xff]  }
 0x190   :  { %4265 = vtanh.f32 %v4538_v50 }
 0x19a   :  { %v4266_v51 = vpop.eup %4265 }
 0x19b   :  { %v207_v53 = vmul.f32 %v4266_v51, %v202_v52  ;;  %v4119_v51 = vld [vmem:[%s5387_s3 + $0x50] sm:$0xff]   ;;  %v4120_v52 = vld [vmem:[%s5387_s3 + $0x58] sm:$0xff]  }
 0x19d   :  { %v208_v55 = vpack.c.bf16 %v207_v53, %v207_v53 }
 0x19f   :  { %3578 = vmatmul.mubr.bf16.vlgmr.msra.gmra.mrb[8].mxu0 %v208_v55  ;;  %3618 = vmatmul.mubr.bf16.vlgmr.msra.gmra.mrb[0].mxu1 %v208_v55 }
 0x1a0   :  { %3582 = vmatpush3.bf16.msra.mxu0 %v4093_v54  ;;  %3597 = vmatprep.mubr.msk.bf16.mxu0 %vm4382_vm0, %v4381_v1 }
 0x1a1   :  { %3583 = vmatprep.subr.bf16.mxu0 %v4381_v1  ;;  %3637 = vmatprep.mubr.msk.bf16.mxu1 %vm4382_vm0, %v4381_v1 }
 0x1a2   :  { %3622 = vmatpush3.bf16.msra.mxu1 %v4101_v63 }
 0x1a3   :  { %3623 = vmatprep.subr.bf16.mxu1 %v4381_v1 }
 0x1a4   :  { %3584 = vmatpush3.bf16.msra.mxu0 %v4094_v56 }
 0x1a5   :  { %3585 = vmatprep.subr.bf16.mxu0 %v4381_v1 }
 0x1a6   :  { %3624 = vmatpush3.bf16.msra.mxu1 %v4103_v2 }
 0x1a7   :  { %3625 = vmatprep.subr.bf16.mxu1 %v4381_v1 }
 0x1a8   :  { %3586 = vmatpush3.bf16.msra.mxu0 %v4095_v57  ;;  %v4121_v57 = vld [vmem:[%s5387_s3 + $0x60] sm:$0xff]  }
 0x1a9   :  { %3587 = vmatprep.subr.bf16.mxu0 %v4381_v1 }
 0x1aa   :  { %3626 = vmatpush3.bf16.msra.mxu1 %v4105_v4  ;;  %v4126_v4 = vld [vmem:[%s5387_s3] sm:$0xff]  }
 0x1ab   :  { %3627 = vmatprep.subr.bf16.mxu1 %v4381_v1 }
 0x1ac   :  { %3588 = vmatpush3.bf16.msra.mxu0 %v4096_v58 }
 0x1ad   :  { %3589 = vmatprep.subr.bf16.mxu0 %v4381_v1 }
 0x1ae   :  { %3628 = vmatpush3.bf16.msra.mxu1 %v4107_v15 }
 0x1af   :  { %3629 = vmatprep.subr.bf16.mxu1 %v4381_v1 }
 0x1b0   :  { %3590 = vmatpush3.bf16.msra.mxu0 %v4097_v59  ;;  %v4122_v59 = vld [vmem:[%s5387_s3 + $0x68] sm:$0xff]  }
 0x1b1   :  { %3591 = vmatprep.subr.bf16.mxu0 %v4381_v1 }
 0x1b2   :  { %3630 = vmatpush3.bf16.msra.mxu1 %v4109_v17 }
 0x1b3   :  { %3631 = vmatprep.subr.bf16.mxu1 %v4381_v1 }
 0x1b4   :  { %3592 = vmatpush3.bf16.msra.mxu0 %v4098_v60  ;;  %v4123_v60 = vld [vmem:[%s5387_s3 + $0x70] sm:$0xff]  }
 0x1b5   :  { %3593 = vmatprep.subr.bf16.mxu0 %v4381_v1 }
 0x1b6   :  { %3632 = vmatpush3.bf16.msra.mxu1 %v4111_v19  ;;  %v4132_v19 = vld [vmem:[%s5387_s3 + $0x18] sm:$0xff]  }
 0x1b7   :  { %3633 = vmatprep.subr.bf16.mxu1 %v4381_v1 }
 0x1b8   :  { %3594 = vmatpush3.bf16.msra.mxu0 %v4099_v61  ;;  %v4124_v61 = vld [vmem:[%s5387_s3 + $0x78] sm:$0xff]  }
 0x1b9   :  { %3595 = vmatprep.subr.bf16.mxu0 %v4381_v1 }
 0x1ba   :  { %3634 = vmatpush3.bf16.msra.mxu1 %v4113_v22  ;;  %v4135_v22 = vld [vmem:[%s5386_s2 + $0x28] sm:$0xff]  }
 0x1bb   :  { %3635 = vmatprep.subr.bf16.mxu1 %v4381_v1 }
 0x1bc   :  { %3596 = vmatpush3.bf16.msra.mxu0 %v4100_v62 }
 0x1bd   :  { %3661 = vmatprep.subr.bf16.mxu0 %v4381_v1 }
 0x1be   :  { %3636 = vmatpush3.bf16.msra.mxu1 %v4115_v28  ;;  %v4138_v28 = vld [vmem:[%s5387_s3 + $0x30] sm:$0xff]  }
 0x1bf   :  { %3598 = vmatmul.mubr.bf16.vlgmr.msra.gmra.mrb[8].mxu0 %v4383_v11  ;;  %3641 = vmatprep.subr.bf16.mxu1 %v4381_v1 }
 0x1c0   :  { %3677 = vmatprep.mubr.msk.bf16.mxu0 %vm4382_vm0, %v4381_v1  ;;  %3662 = vmatpush3.bf16.msra.mxu0 %v4102_v0 }
 0x1c1   :  { %3663 = vmatprep.subr.bf16.mxu0 %v4381_v1 }
 0x1c4   :  { %3664 = vmatpush3.bf16.msra.mxu0 %v4104_v3  ;;  %v4125_v3 = vld [vmem:[%s5386_s2] sm:$0xff]  }
 0x1c5   :  { %3665 = vmatprep.subr.bf16.mxu0 %v4381_v1 }
 0x1c8   :  { %3666 = vmatpush3.bf16.msra.mxu0 %v4106_v13 }
 0x1c9   :  { %3667 = vmatprep.subr.bf16.mxu0 %v4381_v1 }
 0x1cc   :  { %3668 = vmatpush3.bf16.msra.mxu0 %v4108_v16  ;;  %v4130_v16 = vld [vmem:[%s5387_s3 + $0x10] sm:$0xff]  }
 0x1cd   :  { %3669 = vmatprep.subr.bf16.mxu0 %v4381_v1 }
 0x1d0   :  { %3670 = vmatpush3.bf16.msra.mxu0 %v4110_v18  ;;  %v4131_v18 = vld [vmem:[%s5386_s2 + $0x18] sm:$0xff]  }
 0x1d1   :  { %3671 = vmatprep.subr.bf16.mxu0 %v4381_v1 }
 0x1d4   :  { %3672 = vmatpush3.bf16.msra.mxu0 %v4112_v20  ;;  %v4133_v20 = vld [vmem:[%s5386_s2 + $0x20] sm:$0xff]  }
 0x1d5   :  { %3673 = vmatprep.subr.bf16.mxu0 %v4381_v1 }
 0x1d8   :  { %3674 = vmatpush3.bf16.msra.mxu0 %v4114_v25  ;;  %v4137_v25 = vld [vmem:[%s5386_s2 + $0x30] sm:$0xff]  }
 0x1d9   :  { %3675 = vmatprep.subr.bf16.mxu0 %v4381_v1 }
 0x1dc   :  { %3676 = vmatpush3.bf16.msra.mxu0 %v4116_v32 }
 0x1dd   :  { %3681 = vmatprep.subr.bf16.mxu0 %v4381_v1 }
 0x272   :  { %v540_v6 = vpop.f32.mrb[0].mxu1 }
 0x273   :  { %v546_v7 = vadd.f32 %v540_v6, %v441_v5  ;;  %v3619_v8 = vpop.f32.mrb[1].mxu1  ;;  %v4127_v5 = vld [vmem:[%s5386_s2 + $0x8] sm:$0xff]  }
 0x274   :  { %v543_v9 = vpop.f32.mrb[2].mxu1  ;;  %v4128_v6 = vld [vmem:[%s5387_s3 + $0x8] sm:$0xff]   ;;  %v798_v8 = vld [vmem:[#allocation2 + $0x2] sm:$0x1] }
 0x275   :  { %v3010_v10 = vmul.f32 -1.442695, %v546_v7  ;;  %v3620_v11 = vpop.f32.mrb[3].mxu1  ;;  %v4129_v7 = vld [vmem:[%s5386_s2 + $0x10] sm:$0xff]  }
 0x277   :  { %4267 = vpow2.f32 %v3010_v10 }
 0x281   :  { %v4268_v12 = vpop.eup %4267 }
 0x282   :  { %v550_v14 = vadd.f32 1.0, %v4268_v12 }
 0x284   :  { %4269 = vrcp.f32 %v550_v14 }
 0x28e   :  { %v4270_v21 = vpop.eup %4269 }
 0x28f   :  { %555 = vrot.lane.b32.xlu1 %v4270_v21, %s4385_s15  ;;  %v553_v23 = vmul.f32 2.0, %v4270_v21 }
 0x291   :  { %v3011_v26 = vadd.f32 -1.0, %v553_v23  ;;  %v4136_v23 = vld [vmem:[%s5387_s3 + $0x28] sm:$0xff]  }
 0x292   :  { %v414_v27 = vpop.f32.mrb[8].mxu0 }
 0x293   :  { %v4021_v29 = vadd.f32 %v2967_v24, %v414_v27  ;;  %v3599_v30 = vpop.f32.mrb[9].mxu0  ;;  %559 = vrot.lane.b32.xlu1 %v4270_v21, %s4384_s14  ;;  %557 = vrot.lane.b32.xlu0 %v3011_v26, %s4386_s20  ;;  %v3012_v27 = vld [vmem:[%s5388_s4 + $0x1] sm:$0x1] }
 0x294   :  { %v417_v31 = vpop.f32.mrb[10].mxu0 }
 0x295   :  { %v3000_v33 = vmul.f32 -1.442695, %v4021_v29  ;;  %v3600_v34 = vpop.f32.mrb[11].mxu0  ;;  %v4139_v31 = vld [vmem:[%s5386_s2 + $0x38] sm:$0xff]  }
 0x297   :  { %4271 = vpow2.f32 %v3000_v33 }
 0x2a1   :  { %v4272_v35 = vpop.eup %4271 }
 0x2a2   :  { %v424_v36 = vadd.f32 1.0, %v4272_v35  ;;  %v4140_v35 = vld [vmem:[%s5387_s3 + $0x38] sm:$0xff]  }
 0x2a4   :  { %4273 = vrcp.f32 %v424_v36 }
 0x2ae   :  { %v4274_v37 = vpop.eup %4273 }
 0x2af   :  { %429 = vrot.lane.b32.xlu0 %v4274_v37, %s4385_s15  ;;  %v427_v38 = vmul.f32 2.0, %v4274_v37 }
 0x2b1   :  { %v3001_v39 = vadd.f32 -1.0, %v427_v38 }
 0x2b3   :  { %433 = vrot.lane.b32.xlu0 %v4274_v37, %s4384_s14  ;;  %431 = vrot.lane.b32.xlu1 %v3001_v39, %s4386_s20 }
 0x301   :  { %v556_v40 = vpop.permute.xlu1 %555 }
 0x302   :  { %v561_v42 = vmul.f32 %v556_v40, %v4538_v50  ;;  %v4118_v50 = vld [vmem:[%s5387_s3 + $0x48] sm:$0xff]  }
 0x305   :  { %v558_v41 = vpop.permute.xlu0 %557  ;;  %v560_v46 = vpop.permute.xlu1 %559 }
 0x306   :  { %v562_v43 = vmul.f32 %v4270_v21, %v558_v41  ;;  %v4134_v21 = vld [vmem:[%s5387_s3 + $0x20] sm:$0xff]  }
 0x308   :  { %v4654_v44 = vadd.f32 %v562_v43, %v561_v42 }
 0x30a   :  { %4275 = vtanh.f32 %v4654_v44 }
 0x314   :  { %v4276_v45 = vpop.eup %4275 }
 0x315   :  { %v565_v47 = vmul.f32 %v4276_v45, %v560_v46 }
 0x317   :  { %v566_v49 = vpack.c.bf16 %v565_v47, %v565_v47 }
 0x319   :  { %3638 = vmatmul.mubr.bf16.vlgmr.msra.gmra.mrb[4].mxu1 %v566_v49  ;;  %3678 = vmatmul.mubr.bf16.vlgmr.msra.gmra.mrb[12].mxu0 %v566_v49 }
 0x31a   :  { %3642 = vmatpush3.bf16.msra.mxu1 %v4117_v48  ;;  %3657 = vmatprep.mubr.msk.bf16.mxu1 %vm4382_vm0, %v4381_v1 }
 0x31b   :  { %3643 = vmatprep.subr.bf16.mxu1 %v4381_v1  ;;  %3697 = vmatprep.mubr.msk.bf16.mxu0 %vm4382_vm0, %v4381_v1 }
 0x31c   :  { %3682 = vmatpush3.bf16.msra.mxu0 %v4125_v3 }
 0x31d   :  { %3683 = vmatprep.subr.bf16.mxu0 %v4381_v1 }
 0x31e   :  { %3644 = vmatpush3.bf16.msra.mxu1 %v4118_v50 }
 0x31f   :  { %3645 = vmatprep.subr.bf16.mxu1 %v4381_v1 }
 0x320   :  { %3684 = vmatpush3.bf16.msra.mxu0 %v4127_v5 }
 0x321   :  { %v430_v53 = vpop.permute.xlu0 %429  ;;  %3685 = vmatprep.subr.bf16.mxu0 %v4381_v1 }
 0x322   :  { %3646 = vmatpush3.bf16.msra.mxu1 %v4119_v51  ;;  %v435_v55 = vmul.f32 0.0, %v430_v53 }
 0x323   :  { %3647 = vmatprep.subr.bf16.mxu1 %v4381_v1 }
 0x324   :  { %3686 = vmatpush3.bf16.msra.mxu0 %v4129_v7  ;;  %v4150_v7 = vld [vmem:[%s5387_s3] sm:$0xff]  }
 0x325   :  { %v432_v54 = vpop.permute.xlu1 %431  ;;  %v434_v63 = vpop.permute.xlu0 %433  ;;  %3687 = vmatprep.subr.bf16.mxu0 %v4381_v1 }
 0x326   :  { %v436_v56 = vmul.f32 %v4274_v37, %v432_v54  ;;  %3648 = vmatpush3.bf16.msra.mxu1 %v4120_v52  ;;  %v4141_v52 = vld [vmem:[%s5387_s3 + $0x40] sm:$0xff]   ;;  %v4143_v54 = vld [vmem:[%s5387_s3 + $0x50] sm:$0xff]  }
 0x327   :  { %3649 = vmatprep.subr.bf16.mxu1 %v4381_v1 }
 0x328   :  { %v4680_v58 = vadd.f32 %v436_v56, %v435_v55  ;;  %3688 = vmatpush3.bf16.msra.mxu0 %v4131_v18  ;;  %v4144_v55 = vld [vmem:[%s5387_s3 + $0x58] sm:$0xff]  }
 0x329   :  { %3689 = vmatprep.subr.bf16.mxu0 %v4381_v1 }
 0x32a   :  { %4277 = vtanh.f32 %v4680_v58  ;;  %3650 = vmatpush3.bf16.msra.mxu1 %v4121_v57 }
 0x32b   :  { %3651 = vmatprep.subr.bf16.mxu1 %v4381_v1 }
 0x32c   :  { %3690 = vmatpush3.bf16.msra.mxu0 %v4133_v20 }
 0x32d   :  { %3691 = vmatprep.subr.bf16.mxu0 %v4381_v1 }
 0x32e   :  { %3652 = vmatpush3.bf16.msra.mxu1 %v4122_v59 }
 0x32f   :  { %3653 = vmatprep.subr.bf16.mxu1 %v4381_v1 }
 0x330   :  { %3692 = vmatpush3.bf16.msra.mxu0 %v4135_v22  ;;  %v4156_v22 = vld [vmem:[%s5387_s3 + $0x18] sm:$0xff]  }
 0x331   :  { %3693 = vmatprep.subr.bf16.mxu0 %v4381_v1 }
 0x332   :  { %3654 = vmatpush3.bf16.msra.mxu1 %v4123_v60 }
 0x333   :  { %3655 = vmatprep.subr.bf16.mxu1 %v4381_v1 }
 0x334   :  { %v4278_v62 = vpop.eup %4277  ;;  %3694 = vmatpush3.bf16.msra.mxu0 %v4137_v25  ;;  %v4159_v25 = vld [vmem:[%s5386_s2 + $0x28] sm:$0xff]  }
 0x335   :  { %v439_v0 = vmul.f32 %v4278_v62, %v434_v63  ;;  %3695 = vmatprep.subr.bf16.mxu0 %v4381_v1  ;;  %v4146_v63 = vld [vmem:[%s5387_s3 + $0x68] sm:$0xff]  }
 0x336   :  { %3656 = vmatpush3.bf16.msra.mxu1 %v4124_v61  ;;  %v4145_v61 = vld [vmem:[%s5387_s3 + $0x60] sm:$0xff]  }
 0x337   :  { %440 = vst [vmem:[#allocation3] sm:$0x1] %v439_v0  ;;  %v672_v2 = vpack.c.bf16 %v439_v0, %v439_v0  ;;  %3721 = vmatprep.subr.bf16.mxu1 %v4381_v1  ;;  %v4148_v0 = vld [vmem:[%s5387_s3 + $0x78] sm:$0xff]  }
 0x338   :  { %3696 = vmatpush3.bf16.msra.mxu0 %v4139_v31  ;;  %v4162_v31 = vld [vmem:[%s5387_s3 + $0x30] sm:$0xff]  }
 0x339   :  { %3658 = vmatmul.mubr.bf16.vlgmr.msra.gmra.mrb[4].mxu1 %v672_v2  ;;  %3701 = vmatprep.subr.bf16.mxu0 %v4381_v1 }
 0x33a   :  { %3737 = vmatprep.mubr.msk.bf16.mxu1 %vm4382_vm0, %v4381_v1  ;;  %3722 = vmatpush3.bf16.msra.mxu1 %v4126_v4 }
 0x33b   :  { %3723 = vmatprep.subr.bf16.mxu1 %v4381_v1 }
 0x33e   :  { %3724 = vmatpush3.bf16.msra.mxu1 %v4128_v6  ;;  %v4149_v6 = vld [vmem:[%s5386_s2] sm:$0xff]  }
 0x33f   :  { %3725 = vmatprep.subr.bf16.mxu1 %v4381_v1 }
 0x342   :  { %3726 = vmatpush3.bf16.msra.mxu1 %v4130_v16 }
 0x343   :  { %3727 = vmatprep.subr.bf16.mxu1 %v4381_v1 }
 0x346   :  { %3728 = vmatpush3.bf16.msra.mxu1 %v4132_v19  ;;  %v4154_v19 = vld [vmem:[%s5387_s3 + $0x10] sm:$0xff]  }
 0x347   :  { %3729 = vmatprep.subr.bf16.mxu1 %v4381_v1 }
 0x34a   :  { %3730 = vmatpush3.bf16.msra.mxu1 %v4134_v21  ;;  %v4155_v21 = vld [vmem:[%s5386_s2 + $0x18] sm:$0xff]  }
 0x34b   :  { %3731 = vmatprep.subr.bf16.mxu1 %v4381_v1 }
 0x34e   :  { %3732 = vmatpush3.bf16.msra.mxu1 %v4136_v23  ;;  %v4157_v23 = vld [vmem:[%s5386_s2 + $0x20] sm:$0xff]  }
 0x34f   :  { %3733 = vmatprep.subr.bf16.mxu1 %v4381_v1 }
 0x352   :  { %3734 = vmatpush3.bf16.msra.mxu1 %v4138_v28  ;;  %v4161_v28 = vld [vmem:[%s5386_s2 + $0x30] sm:$0xff]  }
 0x353   :  { %3735 = vmatprep.subr.bf16.mxu1 %v4381_v1 }
 0x356   :  { %3736 = vmatpush3.bf16.msra.mxu1 %v4140_v35 }
 0x357   :  { %3741 = vmatprep.subr.bf16.mxu1 %v4381_v1 }
 0x3ec   :  { %v897_v9 = vpop.f32.mrb[12].mxu0 }
 0x3ed   :  { %v903_v10 = vadd.f32 %v897_v9, %v798_v8  ;;  %v3679_v11 = vpop.f32.mrb[13].mxu0  ;;  %v4151_v8 = vld [vmem:[%s5386_s2 + $0x8] sm:$0xff]  }
 0x3ee   :  { %v900_v12 = vpop.f32.mrb[14].mxu0  ;;  %v4152_v9 = vld [vmem:[%s5387_s3 + $0x8] sm:$0xff]   ;;  %v1155_v11 = vld [vmem:[#allocation2 + $0x3] sm:$0x1] }
 0x3ef   :  { %v3055_v13 = vmul.f32 -1.442695, %v903_v10  ;;  %v3680_v14 = vpop.f32.mrb[15].mxu0  ;;  %v4153_v10 = vld [vmem:[%s5386_s2 + $0x10] sm:$0xff]  }
 0x3f1   :  { %4279 = vpow2.f32 %v3055_v13 }
 0x3fb   :  { %v4280_v15 = vpop.eup %4279 }
 0x3fc   :  { %v907_v17 = vadd.f32 1.0, %v4280_v15 }
 0x3fe   :  { %4281 = vrcp.f32 %v907_v17 }
 0x408   :  { %v4282_v24 = vpop.eup %4281 }
 0x409   :  { %912 = vrot.lane.b32.xlu1 %v4282_v24, %s4385_s15  ;;  %v910_v26 = vmul.f32 2.0, %v4282_v24 }
 0x40b   :  { %v3056_v29 = vadd.f32 -1.0, %v910_v26  ;;  %v4160_v26 = vld [vmem:[%s5387_s3 + $0x28] sm:$0xff]  }
 0x40c   :  { %v771_v30 = vpop.f32.mrb[4].mxu1 }
 0x40d   :  { %v4022_v32 = vadd.f32 %v3012_v27, %v771_v30  ;;  %v3659_v33 = vpop.f32.mrb[5].mxu1  ;;  %916 = vrot.lane.b32.xlu1 %v4282_v24, %s4384_s14  ;;  %914 = vrot.lane.b32.xlu0 %v3056_v29, %s4386_s20  ;;  %v3057_v30 = vld [vmem:[%s5388_s4 + $0x1] sm:$0x1] }
 0x40e   :  { %v774_v34 = vpop.f32.mrb[6].mxu1 }
 0x40f   :  { %v3045_v36 = vmul.f32 -1.442695, %v4022_v32  ;;  %v3660_v37 = vpop.f32.mrb[7].mxu1  ;;  %v4163_v34 = vld [vmem:[%s5386_s2 + $0x38] sm:$0xff]  }
 0x411   :  { %4283 = vpow2.f32 %v3045_v36 }
 0x41b   :  { %v4284_v38 = vpop.eup %4283 }
 0x41c   :  { %v781_v39 = vadd.f32 1.0, %v4284_v38  ;;  %v4164_v38 = vld [vmem:[%s5387_s3 + $0x38] sm:$0xff]  }
 0x41e   :  { %4285 = vrcp.f32 %v781_v39 }
 0x428   :  { %v4286_v40 = vpop.eup %4285 }
 0x429   :  { %786 = vrot.lane.b32.xlu0 %v4286_v40, %s4385_s15  ;;  %v784_v41 = vmul.f32 2.0, %v4286_v40 }
 0x42b   :  { %v3046_v42 = vadd.f32 -1.0, %v784_v41 }
 0x42d   :  { %788 = vrot.lane.b32.xlu1 %v3046_v42, %s4386_s20  ;;  %790 = vrot.lane.b32.xlu0 %v4286_v40, %s4384_s14 }
 0x47b   :  { %v913_v43 = vpop.permute.xlu1 %912 }
 0x47c   :  { %v918_v46 = vmul.f32 %v913_v43, %v4654_v44  ;;  %v4142_v44 = vld [vmem:[%s5387_s3 + $0x48] sm:$0xff]  }
 0x47f   :  { %v915_v45 = vpop.permute.xlu0 %914  ;;  %v917_v50 = vpop.permute.xlu1 %916 }
 0x480   :  { %v919_v47 = vmul.f32 %v4282_v24, %v915_v45  ;;  %v4158_v24 = vld [vmem:[%s5387_s3 + $0x20] sm:$0xff]  }
 0x482   :  { %v4772_v48 = vadd.f32 %v919_v47, %v918_v46 }
 0x484   :  { %4287 = vtanh.f32 %v4772_v48 }
 0x48e   :  { %v4288_v49 = vpop.eup %4287 }
 0x48f   :  { %v922_v51 = vmul.f32 %v4288_v49, %v917_v50 }
 0x491   :  { %v923_v53 = vpack.c.bf16 %v922_v51, %v922_v51 }
 0x493   :  { %3698 = vmatmul.mubr.bf16.vlgmr.msra.gmra.mrb[16].mxu0 %v923_v53  ;;  %3738 = vmatmul.mubr.bf16.vlgmr.msra.gmra.mrb[8].mxu1 %v923_v53 }
 0x494   :  { %3702 = vmatpush3.bf16.msra.mxu0 %v4141_v52  ;;  %3717 = vmatprep.mubr.msk.bf16.mxu0 %vm4382_vm0, %v4381_v1 }
 0x495   :  { %3703 = vmatprep.subr.bf16.mxu0 %v4381_v1  ;;  %3757 = vmatprep.mubr.msk.bf16.mxu1 %vm4382_vm0, %v4381_v1 }
 0x496   :  { %3742 = vmatpush3.bf16.msra.mxu1 %v4149_v6 }
 0x497   :  { %3743 = vmatprep.subr.bf16.mxu1 %v4381_v1 }
 0x498   :  { %3704 = vmatpush3.bf16.msra.mxu0 %v4142_v44 }
 0x499   :  { %3705 = vmatprep.subr.bf16.mxu0 %v4381_v1 }
 0x49a   :  { %3744 = vmatpush3.bf16.msra.mxu1 %v4151_v8 }
 0x49b   :  { %v787_v56 = vpop.permute.xlu0 %786  ;;  %3745 = vmatprep.subr.bf16.mxu1 %v4381_v1 }
 0x49c   :  { %3706 = vmatpush3.bf16.msra.mxu0 %v4143_v54  ;;  %v792_v59 = vmul.f32 %v787_v56, %v4680_v58  ;;  %v4147_v58 = vld [vmem:[%s5387_s3 + $0x70] sm:$0xff]  }
 0x49d   :  { %3707 = vmatprep.subr.bf16.mxu0 %v4381_v1 }
 0x49e   :  { %3746 = vmatpush3.bf16.msra.mxu1 %v4153_v10  ;;  %v4174_v10 = vld [vmem:[%s5387_s3] sm:$0xff]  }
 0x49f   :  { %v789_v57 = vpop.permute.xlu1 %788  ;;  %v791_v3 = vpop.permute.xlu0 %790  ;;  %3747 = vmatprep.subr.bf16.mxu1 %v4381_v1 }
 0x4a0   :  { %v793_v60 = vmul.f32 %v4286_v40, %v789_v57  ;;  %3708 = vmatpush3.bf16.msra.mxu0 %v4144_v55  ;;  %v4165_v55 = vld [vmem:[%s5387_s3 + $0x40] sm:$0xff]   ;;  %v4167_v57 = vld [vmem:[%s5387_s3 + $0x50] sm:$0xff]  }
 0x4a1   :  { %3709 = vmatprep.subr.bf16.mxu0 %v4381_v1 }
 0x4a2   :  { %v4799_v62 = vadd.f32 %v793_v60, %v792_v59  ;;  %3748 = vmatpush3.bf16.msra.mxu1 %v4155_v21  ;;  %v4168_v59 = vld [vmem:[%s5387_s3 + $0x58] sm:$0xff]  }
 0x4a3   :  { %3749 = vmatprep.subr.bf16.mxu1 %v4381_v1 }
 0x4a4   :  { %4289 = vtanh.f32 %v4799_v62  ;;  %3710 = vmatpush3.bf16.msra.mxu0 %v4145_v61 }
 0x4a5   :  { %3711 = vmatprep.subr.bf16.mxu0 %v4381_v1 }
 0x4a6   :  { %3750 = vmatpush3.bf16.msra.mxu1 %v4157_v23 }
 0x4a7   :  { %3751 = vmatprep.subr.bf16.mxu1 %v4381_v1 }
 0x4a8   :  { %3712 = vmatpush3.bf16.msra.mxu0 %v4146_v63 }
 0x4a9   :  { %3713 = vmatprep.subr.bf16.mxu0 %v4381_v1 }
 0x4aa   :  { %3752 = vmatpush3.bf16.msra.mxu1 %v4159_v25  ;;  %v4180_v25 = vld [vmem:[%s5387_s3 + $0x18] sm:$0xff]  }
 0x4ab   :  { %3753 = vmatprep.subr.bf16.mxu1 %v4381_v1 }
 0x4ac   :  { %3714 = vmatpush3.bf16.msra.mxu0 %v4147_v58 }
 0x4ad   :  { %3715 = vmatprep.subr.bf16.mxu0 %v4381_v1 }
 0x4ae   :  { %v4290_v2 = vpop.eup %4289  ;;  %3754 = vmatpush3.bf16.msra.mxu1 %v4161_v28  ;;  %v4183_v28 = vld [vmem:[%s5386_s2 + $0x28] sm:$0xff]  }
 0x4af   :  { %v796_v4 = vmul.f32 %v4290_v2, %v791_v3  ;;  %3755 = vmatprep.subr.bf16.mxu1 %v4381_v1  ;;  %v4170_v3 = vld [vmem:[%s5387_s3 + $0x68] sm:$0xff]  }
 0x4b0   :  { %3716 = vmatpush3.bf16.msra.mxu0 %v4148_v0  ;;  %v4169_v0 = vld [vmem:[%s5387_s3 + $0x60] sm:$0xff]  }
 0x4b1   :  { %797 = vst [vmem:[#allocation3 + $0x1] sm:$0x1] %v796_v4  ;;  %v1029_v5 = vpack.c.bf16 %v796_v4, %v796_v4  ;;  %3781 = vmatprep.subr.bf16.mxu0 %v4381_v1  ;;  %v4172_v4 = vld [vmem:[%s5387_s3 + $0x78] sm:$0xff]  }
 0x4b2   :  { %3756 = vmatpush3.bf16.msra.mxu1 %v4163_v34  ;;  %v4186_v34 = vld [vmem:[%s5387_s3 + $0x30] sm:$0xff]  }
 0x4b3   :  { %3718 = vmatmul.mubr.bf16.vlgmr.msra.gmra.mrb[16].mxu0 %v1029_v5  ;;  %3761 = vmatprep.subr.bf16.mxu1 %v4381_v1 }
 0x4b4   :  { %3797 = vmatprep.mubr.msk.bf16.mxu0 %vm4382_vm0, %v4381_v1  ;;  %3782 = vmatpush3.bf16.msra.mxu0 %v4150_v7 }
 0x4b5   :  { %3783 = vmatprep.subr.bf16.mxu0 %v4381_v1 }
 0x4b8   :  { %3784 = vmatpush3.bf16.msra.mxu0 %v4152_v9  ;;  %v4173_v9 = vld [vmem:[%s5386_s2] sm:$0xff]  }
 0x4b9   :  { %3785 = vmatprep.subr.bf16.mxu0 %v4381_v1 }
 0x4bc   :  { %3786 = vmatpush3.bf16.msra.mxu0 %v4154_v19 }
 0x4bd   :  { %3787 = vmatprep.subr.bf16.mxu0 %v4381_v1 }
 0x4c0   :  { %3788 = vmatpush3.bf16.msra.mxu0 %v4156_v22  ;;  %v4178_v22 = vld [vmem:[%s5387_s3 + $0x10] sm:$0xff]  }
 0x4c1   :  { %3789 = vmatprep.subr.bf16.mxu0 %v4381_v1 }
 0x4c4   :  { %3790 = vmatpush3.bf16.msra.mxu0 %v4158_v24  ;;  %v4179_v24 = vld [vmem:[%s5386_s2 + $0x18] sm:$0xff]  }
 0x4c5   :  { %3791 = vmatprep.subr.bf16.mxu0 %v4381_v1 }
 0x4c8   :  { %3792 = vmatpush3.bf16.msra.mxu0 %v4160_v26  ;;  %v4181_v26 = vld [vmem:[%s5386_s2 + $0x20] sm:$0xff]  }
 0x4c9   :  { %3793 = vmatprep.subr.bf16.mxu0 %v4381_v1 }
 0x4cc   :  { %3794 = vmatpush3.bf16.msra.mxu0 %v4162_v31  ;;  %v4185_v31 = vld [vmem:[%s5386_s2 + $0x30] sm:$0xff]  }
 0x4cd   :  { %3795 = vmatprep.subr.bf16.mxu0 %v4381_v1 }
 0x4d0   :  { %3796 = vmatpush3.bf16.msra.mxu0 %v4164_v38 }
 0x4d1   :  { %3801 = vmatprep.subr.bf16.mxu0 %v4381_v1 }
 0x566   :  { %v1254_v12 = vpop.f32.mrb[8].mxu1 }
 0x567   :  { %v1260_v13 = vadd.f32 %v1254_v12, %v1155_v11  ;;  %v3739_v14 = vpop.f32.mrb[9].mxu1  ;;  %v4175_v11 = vld [vmem:[%s5386_s2 + $0x8] sm:$0xff]  }
 0x568   :  { %v1257_v15 = vpop.f32.mrb[10].mxu1  ;;  %v4176_v12 = vld [vmem:[%s5387_s3 + $0x8] sm:$0xff]   ;;  %v1512_v14 = vld [vmem:[#allocation2 + $0x4] sm:$0x1] }
 0x569   :  { %v3100_v16 = vmul.f32 -1.442695, %v1260_v13  ;;  %v3740_v17 = vpop.f32.mrb[11].mxu1  ;;  %v4177_v13 = vld [vmem:[%s5386_s2 + $0x10] sm:$0xff]  }
 0x56b   :  { %4291 = vpow2.f32 %v3100_v16 }
 0x575   :  { %v4292_v18 = vpop.eup %4291 }
 0x576   :  { %v1264_v20 = vadd.f32 1.0, %v4292_v18 }
 0x578   :  { %4293 = vrcp.f32 %v1264_v20 }
 0x582   :  { %v4294_v27 = vpop.eup %4293 }
 0x583   :  { %1269 = vrot.lane.b32.xlu1 %v4294_v27, %s4385_s15  ;;  %v1267_v29 = vmul.f32 2.0, %v4294_v27 }
 0x585   :  { %v3101_v32 = vadd.f32 -1.0, %v1267_v29  ;;  %v4184_v29 = vld [vmem:[%s5387_s3 + $0x28] sm:$0xff]  }
 0x586   :  { %v1128_v33 = vpop.f32.mrb[16].mxu0 }
 0x587   :  { %v4023_v35 = vadd.f32 %v3057_v30, %v1128_v33  ;;  %v3719_v36 = vpop.f32.mrb[17].mxu0  ;;  %1273 = vrot.lane.b32.xlu1 %v4294_v27, %s4384_s14  ;;  %1271 = vrot.lane.b32.xlu0 %v3101_v32, %s4386_s20  ;;  %v3102_v33 = vld [vmem:[%s5388_s4 + $0x1] sm:$0x1] }
 0x588   :  { %v1131_v37 = vpop.f32.mrb[18].mxu0 }
 0x589   :  { %v3090_v39 = vmul.f32 -1.442695, %v4023_v35  ;;  %v3720_v40 = vpop.f32.mrb[19].mxu0  ;;  %v4187_v37 = vld [vmem:[%s5386_s2 + $0x38] sm:$0xff]  }
 0x58b   :  { %4295 = vpow2.f32 %v3090_v39 }
 0x595   :  { %v4296_v41 = vpop.eup %4295 }
 0x596   :  { %v1138_v42 = vadd.f32 1.0, %v4296_v41  ;;  %v4188_v41 = vld [vmem:[%s5387_s3 + $0x38] sm:$0xff]  }
 0x598   :  { %4297 = vrcp.f32 %v1138_v42 }
 0x5a2   :  { %v4298_v43 = vpop.eup %4297 }
 0x5a3   :  { %1143 = vrot.lane.b32.xlu0 %v4298_v43, %s4385_s15  ;;  %v1141_v45 = vmul.f32 2.0, %v4298_v43 }
 0x5a5   :  { %v3091_v46 = vadd.f32 -1.0, %v1141_v45 }
 0x5a7   :  { %1147 = vrot.lane.b32.xlu0 %v4298_v43, %s4384_s14  ;;  %1145 = vrot.lane.b32.xlu1 %v3091_v46, %s4386_s20 }
 0x5f5   :  { %v1270_v47 = vpop.permute.xlu1 %1269 }
 0x5f6   :  { %v1275_v50 = vmul.f32 %v1270_v47, %v4772_v48  ;;  %v4166_v48 = vld [vmem:[%s5387_s3 + $0x48] sm:$0xff]  }
 0x5f9   :  { %v1272_v49 = vpop.permute.xlu0 %1271  ;;  %v1274_v44 = vpop.permute.xlu1 %1273 }
 0x5fa   :  { %v1276_v51 = vmul.f32 %v4294_v27, %v1272_v49  ;;  %v4182_v27 = vld [vmem:[%s5387_s3 + $0x20] sm:$0xff]  }
 0x5fc   :  { %v4891_v52 = vadd.f32 %v1276_v51, %v1275_v50 }
 0x5fe   :  { %4299 = vtanh.f32 %v4891_v52 }
 0x608   :  { %v4300_v53 = vpop.eup %4299 }
 0x609   :  { %v1279_v54 = vmul.f32 %v4300_v53, %v1274_v44 }
 0x60b   :  { %v1280_v56 = vpack.c.bf16 %v1279_v54, %v1279_v54 }
 0x60d   :  { %3758 = vmatmul.mubr.bf16.vlgmr.msra.gmra.mrb[12].mxu1 %v1280_v56  ;;  %3798 = vmatmul.mubr.bf16.vlgmr.msra.gmra.mrb[20].mxu0 %v1280_v56 }
 0x60e   :  { %3762 = vmatpush3.bf16.msra.mxu1 %v4165_v55  ;;  %3777 = vmatprep.mubr.msk.bf16.mxu1 %vm4382_vm0, %v4381_v1 }
 0x60f   :  { %3763 = vmatprep.subr.bf16.mxu1 %v4381_v1  ;;  %3817 = vmatprep.mubr.msk.bf16.mxu0 %vm4382_vm0, %v4381_v1 }
 0x610   :  { %3802 = vmatpush3.bf16.msra.mxu0 %v4173_v9 }
 0x611   :  { %3803 = vmatprep.subr.bf16.mxu0 %v4381_v1 }
 0x612   :  { %3764 = vmatpush3.bf16.msra.mxu1 %v4166_v48 }
 0x613   :  { %3765 = vmatprep.subr.bf16.mxu1 %v4381_v1 }
 0x614   :  { %3804 = vmatpush3.bf16.msra.mxu0 %v4175_v11 }
 0x615   :  { %v1144_v60 = vpop.permute.xlu0 %1143  ;;  %3805 = vmatprep.subr.bf16.mxu0 %v4381_v1 }
 0x616   :  { %3766 = vmatpush3.bf16.msra.mxu1 %v4167_v57  ;;  %v1149_v63 = vmul.f32 %v1144_v60, %v4799_v62  ;;  %v4171_v62 = vld [vmem:[%s5387_s3 + $0x70] sm:$0xff]  }
 0x617   :  { %3767 = vmatprep.subr.bf16.mxu1 %v4381_v1 }
 0x618   :  { %3806 = vmatpush3.bf16.msra.mxu0 %v4177_v13  ;;  %v4198_v13 = vld [vmem:[%s5387_s3] sm:$0xff]  }
 0x619   :  { %v1146_v61 = vpop.permute.xlu1 %1145  ;;  %v1148_v6 = vpop.permute.xlu0 %1147  ;;  %3807 = vmatprep.subr.bf16.mxu0 %v4381_v1 }
 0x61a   :  { %v1150_v58 = vmul.f32 %v4298_v43, %v1146_v61  ;;  %3768 = vmatpush3.bf16.msra.mxu1 %v4168_v59  ;;  %v4189_v59 = vld [vmem:[%s5387_s3 + $0x40] sm:$0xff]   ;;  %v4191_v61 = vld [vmem:[%s5387_s3 + $0x50] sm:$0xff]  }
 0x61b   :  { %3769 = vmatprep.subr.bf16.mxu1 %v4381_v1 }
 0x61c   :  { %v4918_v2 = vadd.f32 %v1150_v58, %v1149_v63  ;;  %3808 = vmatpush3.bf16.msra.mxu0 %v4179_v24  ;;  %v4192_v63 = vld [vmem:[%s5387_s3 + $0x58] sm:$0xff]  }
 0x61d   :  { %3809 = vmatprep.subr.bf16.mxu0 %v4381_v1 }
 0x61e   :  { %4301 = vtanh.f32 %v4918_v2  ;;  %3770 = vmatpush3.bf16.msra.mxu1 %v4169_v0 }
 0x61f   :  { %3771 = vmatprep.subr.bf16.mxu1 %v4381_v1 }
 0x620   :  { %3810 = vmatpush3.bf16.msra.mxu0 %v4181_v26 }
 0x621   :  { %3811 = vmatprep.subr.bf16.mxu0 %v4381_v1 }
 0x622   :  { %3772 = vmatpush3.bf16.msra.mxu1 %v4170_v3 }
 0x623   :  { %3773 = vmatprep.subr.bf16.mxu1 %v4381_v1 }
 0x624   :  { %3812 = vmatpush3.bf16.msra.mxu0 %v4183_v28  ;;  %v4204_v28 = vld [vmem:[%s5387_s3 + $0x18] sm:$0xff]  }
 0x625   :  { %3813 = vmatprep.subr.bf16.mxu0 %v4381_v1 }
 0x626   :  { %3774 = vmatpush3.bf16.msra.mxu1 %v4171_v62 }
 0x627   :  { %3775 = vmatprep.subr.bf16.mxu1 %v4381_v1 }
 0x628   :  { %v4302_v5 = vpop.eup %4301  ;;  %3814 = vmatpush3.bf16.msra.mxu0 %v4185_v31  ;;  %v4207_v31 = vld [vmem:[%s5386_s2 + $0x28] sm:$0xff]  }
 0x629   :  { %v1153_v7 = vmul.f32 %v4302_v5, %v1148_v6  ;;  %3815 = vmatprep.subr.bf16.mxu0 %v4381_v1  ;;  %v4194_v6 = vld [vmem:[%s5387_s3 + $0x68] sm:$0xff]  }
 0x62a   :  { %3776 = vmatpush3.bf16.msra.mxu1 %v4172_v4  ;;  %v4193_v4 = vld [vmem:[%s5387_s3 + $0x60] sm:$0xff]  }
 0x62b   :  { %1154 = vst [vmem:[#allocation3 + $0x2] sm:$0x1] %v1153_v7  ;;  %v1386_v8 = vpack.c.bf16 %v1153_v7, %v1153_v7  ;;  %3841 = vmatprep.subr.bf16.mxu1 %v4381_v1  ;;  %v4196_v7 = vld [vmem:[%s5387_s3 + $0x78] sm:$0xff]  }
 0x62c   :  { %3816 = vmatpush3.bf16.msra.mxu0 %v4187_v37  ;;  %v4210_v37 = vld [vmem:[%s5387_s3 + $0x30] sm:$0xff]  }
 0x62d   :  { %3778 = vmatmul.mubr.bf16.vlgmr.msra.gmra.mrb[12].mxu1 %v1386_v8  ;;  %3821 = vmatprep.subr.bf16.mxu0 %v4381_v1 }
 0x62e   :  { %3857 = vmatprep.mubr.msk.bf16.mxu1 %vm4382_vm0, %v4381_v1  ;;  %3842 = vmatpush3.bf16.msra.mxu1 %v4174_v10 }
 0x62f   :  { %3843 = vmatprep.subr.bf16.mxu1 %v4381_v1 }
 0x632   :  { %3844 = vmatpush3.bf16.msra.mxu1 %v4176_v12  ;;  %v4197_v12 = vld [vmem:[%s5386_s2] sm:$0xff]  }
 0x633   :  { %3845 = vmatprep.subr.bf16.mxu1 %v4381_v1 }
 0x636   :  { %3846 = vmatpush3.bf16.msra.mxu1 %v4178_v22 }
 0x637   :  { %3847 = vmatprep.subr.bf16.mxu1 %v4381_v1 }
 0x63a   :  { %3848 = vmatpush3.bf16.msra.mxu1 %v4180_v25  ;;  %v4202_v25 = vld [vmem:[%s5387_s3 + $0x10] sm:$0xff]  }
 0x63b   :  { %3849 = vmatprep.subr.bf16.mxu1 %v4381_v1 }
 0x63e   :  { %3850 = vmatpush3.bf16.msra.mxu1 %v4182_v27  ;;  %v4203_v27 = vld [vmem:[%s5386_s2 + $0x18] sm:$0xff]  }
 0x63f   :  { %3851 = vmatprep.subr.bf16.mxu1 %v4381_v1 }
 0x642   :  { %3852 = vmatpush3.bf16.msra.mxu1 %v4184_v29  ;;  %v4205_v29 = vld [vmem:[%s5386_s2 + $0x20] sm:$0xff]  }
 0x643   :  { %3853 = vmatprep.subr.bf16.mxu1 %v4381_v1 }
 0x646   :  { %3854 = vmatpush3.bf16.msra.mxu1 %v4186_v34  ;;  %v4209_v34 = vld [vmem:[%s5386_s2 + $0x30] sm:$0xff]  }
 0x647   :  { %3855 = vmatprep.subr.bf16.mxu1 %v4381_v1 }
 0x64a   :  { %3856 = vmatpush3.bf16.msra.mxu1 %v4188_v41 }
 0x64b   :  { %3861 = vmatprep.subr.bf16.mxu1 %v4381_v1 }
 0x6e0   :  { %v1611_v15 = vpop.f32.mrb[20].mxu0 }
 0x6e1   :  { %v1617_v16 = vadd.f32 %v1611_v15, %v1512_v14  ;;  %v3799_v17 = vpop.f32.mrb[21].mxu0  ;;  %v4199_v14 = vld [vmem:[%s5386_s2 + $0x8] sm:$0xff]  }
 0x6e2   :  { %v1614_v18 = vpop.f32.mrb[22].mxu0  ;;  %v4200_v15 = vld [vmem:[%s5387_s3 + $0x8] sm:$0xff]   ;;  %v1869_v17 = vld [vmem:[#allocation2 + $0x5] sm:$0x1] }
 0x6e3   :  { %v3145_v19 = vmul.f32 -1.442695, %v1617_v16  ;;  %v3800_v20 = vpop.f32.mrb[23].mxu0  ;;  %v4201_v16 = vld [vmem:[%s5386_s2 + $0x10] sm:$0xff]  }
 0x6e5   :  { %4303 = vpow2.f32 %v3145_v19 }
 0x6ef   :  { %v4304_v21 = vpop.eup %4303 }
 0x6f0   :  { %v1621_v23 = vadd.f32 1.0, %v4304_v21 }
 0x6f2   :  { %4305 = vrcp.f32 %v1621_v23 }
 0x6fc   :  { %v4306_v30 = vpop.eup %4305 }
 0x6fd   :  { %1626 = vrot.lane.b32.xlu1 %v4306_v30, %s4385_s15  ;;  %v1624_v32 = vmul.f32 2.0, %v4306_v30 }
 0x6ff   :  { %v3146_v35 = vadd.f32 -1.0, %v1624_v32  ;;  %v4208_v32 = vld [vmem:[%s5387_s3 + $0x28] sm:$0xff]  }
 0x700   :  { %v1485_v36 = vpop.f32.mrb[12].mxu1 }
 0x701   :  { %v4024_v38 = vadd.f32 %v3102_v33, %v1485_v36  ;;  %v3779_v39 = vpop.f32.mrb[13].mxu1  ;;  %1630 = vrot.lane.b32.xlu1 %v4306_v30, %s4384_s14  ;;  %1628 = vrot.lane.b32.xlu0 %v3146_v35, %s4386_s20  ;;  %v3147_v36 = vld [vmem:[%s5388_s4 + $0x1] sm:$0x1] }
 0x702   :  { %v1488_v40 = vpop.f32.mrb[14].mxu1 }
 0x703   :  { %v3135_v42 = vmul.f32 -1.442695, %v4024_v38  ;;  %v3780_v43 = vpop.f32.mrb[15].mxu1  ;;  %v4211_v40 = vld [vmem:[%s5386_s2 + $0x38] sm:$0xff]  }
 0x705   :  { %4307 = vpow2.f32 %v3135_v42 }
 0x70f   :  { %v4308_v45 = vpop.eup %4307 }
 0x710   :  { %v1495_v46 = vadd.f32 1.0, %v4308_v45  ;;  %v4212_v45 = vld [vmem:[%s5387_s3 + $0x38] sm:$0xff]  }
 0x712   :  { %4309 = vrcp.f32 %v1495_v46 }
 0x71c   :  { %v4310_v47 = vpop.eup %4309 }
 0x71d   :  { %1500 = vrot.lane.b32.xlu0 %v4310_v47, %s4385_s15  ;;  %v1498_v49 = vmul.f32 2.0, %v4310_v47 }
 0x71f   :  { %v3136_v50 = vadd.f32 -1.0, %v1498_v49 }
 0x721   :  { %1502 = vrot.lane.b32.xlu1 %v3136_v50, %s4386_s20  ;;  %1504 = vrot.lane.b32.xlu0 %v4310_v47, %s4384_s14 }
 0x76f   :  { %v1627_v51 = vpop.permute.xlu1 %1626 }
 0x770   :  { %v1632_v44 = vmul.f32 %v1627_v51, %v4891_v52  ;;  %v4190_v52 = vld [vmem:[%s5387_s3 + $0x48] sm:$0xff]  }
 0x773   :  { %v1629_v53 = vpop.permute.xlu0 %1628  ;;  %v1631_v48 = vpop.permute.xlu1 %1630 }
 0x774   :  { %v1633_v54 = vmul.f32 %v4306_v30, %v1629_v53  ;;  %v4206_v30 = vld [vmem:[%s5387_s3 + $0x20] sm:$0xff]  }
 0x776   :  { %v5010_v55 = vadd.f32 %v1633_v54, %v1632_v44 }
 0x778   :  { %4311 = vtanh.f32 %v5010_v55 }
 0x782   :  { %v4312_v56 = vpop.eup %4311 }
 0x783   :  { %v1636_v57 = vmul.f32 %v4312_v56, %v1631_v48 }
 0x785   :  { %v1637_v60 = vpack.c.bf16 %v1636_v57, %v1636_v57 }
 0x787   :  { %3818 = vmatmul.mubr.bf16.vlgmr.msra.gmra.mrb[24].mxu0 %v1637_v60  ;;  %3858 = vmatmul.mubr.bf16.vlgmr.msra.gmra.mrb[16].mxu1 %v1637_v60 }
 0x788   :  { %3822 = vmatpush3.bf16.msra.mxu0 %v4189_v59  ;;  %3837 = vmatprep.mubr.msk.bf16.mxu0 %vm4382_vm0, %v4381_v1 }
 0x789   :  { %3823 = vmatprep.subr.bf16.mxu0 %v4381_v1  ;;  %3877 = vmatprep.mubr.msk.bf16.mxu1 %vm4382_vm0, %v4381_v1 }
 0x78a   :  { %3862 = vmatpush3.bf16.msra.mxu1 %v4197_v12 }
 0x78b   :  { %3863 = vmatprep.subr.bf16.mxu1 %v4381_v1 }
 0x78c   :  { %3824 = vmatpush3.bf16.msra.mxu0 %v4190_v52 }
 0x78d   :  { %3825 = vmatprep.subr.bf16.mxu0 %v4381_v1 }
 0x78e   :  { %3864 = vmatpush3.bf16.msra.mxu1 %v4199_v14 }
 0x78f   :  { %v1501_v58 = vpop.permute.xlu0 %1500  ;;  %3865 = vmatprep.subr.bf16.mxu1 %v4381_v1 }
 0x790   :  { %3826 = vmatpush3.bf16.msra.mxu0 %v4191_v61  ;;  %v1506_v3 = vmul.f32 %v1501_v58, %v4918_v2  ;;  %v4195_v2 = vld [vmem:[%s5387_s3 + $0x70] sm:$0xff]  }
 0x791   :  { %3827 = vmatprep.subr.bf16.mxu0 %v4381_v1 }
 0x792   :  { %3866 = vmatpush3.bf16.msra.mxu1 %v4201_v16  ;;  %v4222_v16 = vld [vmem:[%s5387_s3] sm:$0xff]  }
 0x793   :  { %v1503_v0 = vpop.permute.xlu1 %1502  ;;  %v1505_v9 = vpop.permute.xlu0 %1504  ;;  %3867 = vmatprep.subr.bf16.mxu1 %v4381_v1 }
 0x794   :  { %v1507_v62 = vmul.f32 %v4310_v47, %v1503_v0  ;;  %3828 = vmatpush3.bf16.msra.mxu0 %v4192_v63  ;;  %v4213_v63 = vld [vmem:[%s5387_s3 + $0x40] sm:$0xff]   ;;  %v4215_v0 = vld [vmem:[%s5387_s3 + $0x50] sm:$0xff]  }
 0x795   :  { %3829 = vmatprep.subr.bf16.mxu0 %v4381_v1 }
 0x796   :  { %v5037_v5 = vadd.f32 %v1507_v62, %v1506_v3  ;;  %3868 = vmatpush3.bf16.msra.mxu1 %v4203_v27  ;;  %v4216_v3 = vld [vmem:[%s5387_s3 + $0x58] sm:$0xff]  }
 0x797   :  { %3869 = vmatprep.subr.bf16.mxu1 %v4381_v1 }
 0x798   :  { %4313 = vtanh.f32 %v5037_v5  ;;  %3830 = vmatpush3.bf16.msra.mxu0 %v4193_v4 }
 0x799   :  { %3831 = vmatprep.subr.bf16.mxu0 %v4381_v1 }
 0x79a   :  { %3870 = vmatpush3.bf16.msra.mxu1 %v4205_v29 }
 0x79b   :  { %3871 = vmatprep.subr.bf16.mxu1 %v4381_v1 }
 0x79c   :  { %3832 = vmatpush3.bf16.msra.mxu0 %v4194_v6 }
 0x79d   :  { %3833 = vmatprep.subr.bf16.mxu0 %v4381_v1 }
 0x79e   :  { %3872 = vmatpush3.bf16.msra.mxu1 %v4207_v31  ;;  %v4228_v31 = vld [vmem:[%s5387_s3 + $0x18] sm:$0xff]  }
 0x79f   :  { %3873 = vmatprep.subr.bf16.mxu1 %v4381_v1 }
 0x7a0   :  { %3834 = vmatpush3.bf16.msra.mxu0 %v4195_v2 }
 0x7a1   :  { %3835 = vmatprep.subr.bf16.mxu0 %v4381_v1 }
 0x7a2   :  { %v4314_v8 = vpop.eup %4313  ;;  %3874 = vmatpush3.bf16.msra.mxu1 %v4209_v34  ;;  %v4231_v34 = vld [vmem:[%s5386_s2 + $0x28] sm:$0xff]  }
 0x7a3   :  { %v1510_v10 = vmul.f32 %v4314_v8, %v1505_v9  ;;  %3875 = vmatprep.subr.bf16.mxu1 %v4381_v1  ;;  %v4218_v9 = vld [vmem:[%s5387_s3 + $0x68] sm:$0xff]  }
 0x7a4   :  { %3836 = vmatpush3.bf16.msra.mxu0 %v4196_v7  ;;  %v4217_v7 = vld [vmem:[%s5387_s3 + $0x60] sm:$0xff]  }
 0x7a5   :  { %1511 = vst [vmem:[#allocation3 + $0x3] sm:$0x1] %v1510_v10  ;;  %v1743_v11 = vpack.c.bf16 %v1510_v10, %v1510_v10  ;;  %3901 = vmatprep.subr.bf16.mxu0 %v4381_v1  ;;  %v4220_v10 = vld [vmem:[%s5387_s3 + $0x78] sm:$0xff]  }
 0x7a6   :  { %3876 = vmatpush3.bf16.msra.mxu1 %v4211_v40  ;;  %v4234_v40 = vld [vmem:[%s5387_s3 + $0x30] sm:$0xff]  }
 0x7a7   :  { %3838 = vmatmul.mubr.bf16.vlgmr.msra.gmra.mrb[24].mxu0 %v1743_v11  ;;  %3881 = vmatprep.subr.bf16.mxu1 %v4381_v1 }
 0x7a8   :  { %3917 = vmatprep.mubr.msk.bf16.mxu0 %vm4382_vm0, %v4381_v1  ;;  %3902 = vmatpush3.bf16.msra.mxu0 %v4198_v13 }
 0x7a9   :  { %3903 = vmatprep.subr.bf16.mxu0 %v4381_v1 }
 0x7ac   :  { %3904 = vmatpush3.bf16.msra.mxu0 %v4200_v15  ;;  %v4221_v15 = vld [vmem:[%s5386_s2] sm:$0xff]  }
 0x7ad   :  { %3905 = vmatprep.subr.bf16.mxu0 %v4381_v1 }
 0x7b0   :  { %3906 = vmatpush3.bf16.msra.mxu0 %v4202_v25 }
 0x7b1   :  { %3907 = vmatprep.subr.bf16.mxu0 %v4381_v1 }
 0x7b4   :  { %3908 = vmatpush3.bf16.msra.mxu0 %v4204_v28  ;;  %v4226_v28 = vld [vmem:[%s5387_s3 + $0x10] sm:$0xff]  }
 0x7b5   :  { %3909 = vmatprep.subr.bf16.mxu0 %v4381_v1 }
 0x7b8   :  { %3910 = vmatpush3.bf16.msra.mxu0 %v4206_v30  ;;  %v4227_v30 = vld [vmem:[%s5386_s2 + $0x18] sm:$0xff]  }
 0x7b9   :  { %3911 = vmatprep.subr.bf16.mxu0 %v4381_v1 }
 0x7bc   :  { %3912 = vmatpush3.bf16.msra.mxu0 %v4208_v32  ;;  %v4229_v32 = vld [vmem:[%s5386_s2 + $0x20] sm:$0xff]  }
 0x7bd   :  { %3913 = vmatprep.subr.bf16.mxu0 %v4381_v1 }
 0x7c0   :  { %3914 = vmatpush3.bf16.msra.mxu0 %v4210_v37  ;;  %v4233_v37 = vld [vmem:[%s5386_s2 + $0x30] sm:$0xff]  }
 0x7c1   :  { %3915 = vmatprep.subr.bf16.mxu0 %v4381_v1 }
 0x7c4   :  { %3916 = vmatpush3.bf16.msra.mxu0 %v4212_v45 }
 0x7c5   :  { %3921 = vmatprep.subr.bf16.mxu0 %v4381_v1 }
 0x85a   :  { %v1968_v18 = vpop.f32.mrb[16].mxu1 }
 0x85b   :  { %v1974_v19 = vadd.f32 %v1968_v18, %v1869_v17  ;;  %v3859_v20 = vpop.f32.mrb[17].mxu1  ;;  %v4223_v17 = vld [vmem:[%s5386_s2 + $0x8] sm:$0xff]  }
 0x85c   :  { %v1971_v21 = vpop.f32.mrb[18].mxu1  ;;  %v4224_v18 = vld [vmem:[%s5387_s3 + $0x8] sm:$0xff]   ;;  %v2226_v20 = vld [vmem:[#allocation2 + $0x6] sm:$0x1] }
 0x85d   :  { %v3190_v22 = vmul.f32 -1.442695, %v1974_v19  ;;  %v3860_v23 = vpop.f32.mrb[19].mxu1  ;;  %v4225_v19 = vld [vmem:[%s5386_s2 + $0x10] sm:$0xff]  }
 0x85f   :  { %4315 = vpow2.f32 %v3190_v22 }
 0x869   :  { %v4316_v24 = vpop.eup %4315 }
 0x86a   :  { %v1978_v26 = vadd.f32 1.0, %v4316_v24 }
 0x86c   :  { %4317 = vrcp.f32 %v1978_v26 }
 0x876   :  { %v4318_v33 = vpop.eup %4317 }
 0x877   :  { %1983 = vrot.lane.b32.xlu1 %v4318_v33, %s4385_s15  ;;  %v1981_v35 = vmul.f32 2.0, %v4318_v33 }
 0x879   :  { %v3191_v38 = vadd.f32 -1.0, %v1981_v35  ;;  %v4232_v35 = vld [vmem:[%s5387_s3 + $0x28] sm:$0xff]  }
 0x87a   :  { %v1842_v39 = vpop.f32.mrb[24].mxu0 }
 0x87b   :  { %v4025_v41 = vadd.f32 %v3147_v36, %v1842_v39  ;;  %v3839_v42 = vpop.f32.mrb[25].mxu0  ;;  %1987 = vrot.lane.b32.xlu1 %v4318_v33, %s4384_s14  ;;  %1985 = vrot.lane.b32.xlu0 %v3191_v38, %s4386_s20  ;;  %v3192_v39 = vld [vmem:[%s5388_s4 + $0x1] sm:$0x1] }
 0x87c   :  { %v1845_v43 = vpop.f32.mrb[26].mxu0 }
 0x87d   :  { %v3180_v46 = vmul.f32 -1.442695, %v4025_v41  ;;  %v3840_v47 = vpop.f32.mrb[27].mxu0  ;;  %v4235_v43 = vld [vmem:[%s5386_s2 + $0x38] sm:$0xff]  }
 0x87f   :  { %4319 = vpow2.f32 %v3180_v46 }
 0x889   :  { %v4320_v49 = vpop.eup %4319 }
 0x88a   :  { %v1852_v50 = vadd.f32 1.0, %v4320_v49  ;;  %v4236_v49 = vld [vmem:[%s5387_s3 + $0x38] sm:$0xff]  }
 0x88c   :  { %4321 = vrcp.f32 %v1852_v50 }
 0x896   :  { %v4322_v51 = vpop.eup %4321 }
 0x897   :  { %1857 = vrot.lane.b32.xlu0 %v4322_v51, %s4385_s15  ;;  %v1855_v53 = vmul.f32 2.0, %v4322_v51 }
 0x899   :  { %v3181_v44 = vadd.f32 -1.0, %v1855_v53 }
 0x89b   :  { %1861 = vrot.lane.b32.xlu0 %v4322_v51, %s4384_s14  ;;  %1859 = vrot.lane.b32.xlu1 %v3181_v44, %s4386_s20 }
 0x8e9   :  { %v1984_v54 = vpop.permute.xlu1 %1983 }
 0x8ea   :  { %v1989_v48 = vmul.f32 %v1984_v54, %v5010_v55  ;;  %v4214_v55 = vld [vmem:[%s5387_s3 + $0x48] sm:$0xff]  }
 0x8ed   :  { %v1986_v56 = vpop.permute.xlu0 %1985  ;;  %v1988_v52 = vpop.permute.xlu1 %1987 }
 0x8ee   :  { %v1990_v57 = vmul.f32 %v4318_v33, %v1986_v56  ;;  %v4230_v33 = vld [vmem:[%s5387_s3 + $0x20] sm:$0xff]  }
 0x8f0   :  { %v5129_v59 = vadd.f32 %v1990_v57, %v1989_v48 }
 0x8f2   :  { %4323 = vtanh.f32 %v5129_v59 }
 0x8fc   :  { %v4324_v60 = vpop.eup %4323 }
 0x8fd   :  { %v1993_v61 = vmul.f32 %v4324_v60, %v1988_v52 }
 0x8ff   :  { %v1994_v58 = vpack.c.bf16 %v1993_v61, %v1993_v61 }
 0x901   :  { %3878 = vmatmul.mubr.bf16.vlgmr.msra.gmra.mrb[20].mxu1 %v1994_v58  ;;  %3918 = vmatmul.mubr.bf16.vlgmr.msra.gmra.mrb[28].mxu0 %v1994_v58 }
 0x902   :  { %3882 = vmatpush3.bf16.msra.mxu1 %v4213_v63  ;;  %3897 = vmatprep.mubr.msk.bf16.mxu1 %vm4382_vm0, %v4381_v1 }
 0x903   :  { %3883 = vmatprep.subr.bf16.mxu1 %v4381_v1  ;;  %3937 = vmatprep.mubr.msk.bf16.mxu0 %vm4382_vm0, %v4381_v1 }
 0x904   :  { %3922 = vmatpush3.bf16.msra.mxu0 %v4221_v15 }
 0x905   :  { %3923 = vmatprep.subr.bf16.mxu0 %v4381_v1 }
 0x906   :  { %3884 = vmatpush3.bf16.msra.mxu1 %v4214_v55 }
 0x907   :  { %3885 = vmatprep.subr.bf16.mxu1 %v4381_v1 }
 0x908   :  { %3924 = vmatpush3.bf16.msra.mxu0 %v4223_v17 }
 0x909   :  { %v1858_v62 = vpop.permute.xlu0 %1857  ;;  %3925 = vmatprep.subr.bf16.mxu0 %v4381_v1 }
 0x90a   :  { %3886 = vmatpush3.bf16.msra.mxu1 %v4215_v0  ;;  %v1863_v6 = vmul.f32 %v1858_v62, %v5037_v5  ;;  %v4219_v5 = vld [vmem:[%s5387_s3 + $0x70] sm:$0xff]  }
 0x90b   :  { %3887 = vmatprep.subr.bf16.mxu1 %v4381_v1 }
 0x90c   :  { %3926 = vmatpush3.bf16.msra.mxu0 %v4225_v19  ;;  %v4246_v19 = vld [vmem:[%s5386_s2 + $0x8] sm:$0xff]  }
 0x90d   :  { %v1860_v4 = vpop.permute.xlu1 %1859  ;;  %v1862_v12 = vpop.permute.xlu0 %1861  ;;  %3927 = vmatprep.subr.bf16.mxu0 %v4381_v1 }
 0x90e   :  { %v1864_v2 = vmul.f32 %v4322_v51, %v1860_v4  ;;  %3888 = vmatpush3.bf16.msra.mxu1 %v4216_v3  ;;  %v4237_v3 = vld [vmem:[%s5387_s3 + $0x40] sm:$0xff]   ;;  %v4239_v4 = vld [vmem:[%s5387_s3 + $0x50] sm:$0xff]  }
 0x90f   :  { %3889 = vmatprep.subr.bf16.mxu1 %v4381_v1 }
 0x910   :  { %v5156_v8 = vadd.f32 %v1864_v2, %v1863_v6  ;;  %3928 = vmatpush3.bf16.msra.mxu0 %v4227_v30  ;;  %v4240_v6 = vld [vmem:[%s5387_s3 + $0x58] sm:$0xff]  }
 0x911   :  { %3929 = vmatprep.subr.bf16.mxu0 %v4381_v1  ;;  %v4248_v30 = vld [vmem:[%s5386_s2 + $0x18] sm:$0xff]  }
 0x912   :  { %4325 = vtanh.f32 %v5156_v8  ;;  %3890 = vmatpush3.bf16.msra.mxu1 %v4217_v7 }
 0x913   :  { %3891 = vmatprep.subr.bf16.mxu1 %v4381_v1 }
 0x914   :  { %3930 = vmatpush3.bf16.msra.mxu0 %v4229_v32  ;;  %v4250_v32 = vld [vmem:[%s5386_s2 + $0x28] sm:$0xff]  }
 0x915   :  { %3931 = vmatprep.subr.bf16.mxu0 %v4381_v1 }
 0x916   :  { %3892 = vmatpush3.bf16.msra.mxu1 %v4218_v9 }
 0x917   :  { %3893 = vmatprep.subr.bf16.mxu1 %v4381_v1 }
 0x918   :  { %3932 = vmatpush3.bf16.msra.mxu0 %v4231_v34  ;;  %v4251_v34 = vld [vmem:[%s5386_s2 + $0x30] sm:$0xff]  }
 0x919   :  { %3933 = vmatprep.subr.bf16.mxu0 %v4381_v1 }
 0x91a   :  { %3894 = vmatpush3.bf16.msra.mxu1 %v4219_v5 }
 0x91b   :  { %3895 = vmatprep.subr.bf16.mxu1 %v4381_v1 }
 0x91c   :  { %v4326_v11 = vpop.eup %4325  ;;  %3934 = vmatpush3.bf16.msra.mxu0 %v4233_v37 }
 0x91d   :  { %v1867_v13 = vmul.f32 %v4326_v11, %v1862_v12  ;;  %3935 = vmatprep.subr.bf16.mxu0 %v4381_v1  ;;  %v4242_v12 = vld [vmem:[%s5387_s3 + $0x68] sm:$0xff]  }
 0x91e   :  { %3896 = vmatpush3.bf16.msra.mxu1 %v4220_v10  ;;  %v4241_v10 = vld [vmem:[%s5387_s3 + $0x60] sm:$0xff]  }
 0x91f   :  { %1868 = vst [vmem:[#allocation3 + $0x4] sm:$0x1] %v1867_v13  ;;  %v2100_v14 = vpack.c.bf16 %v1867_v13, %v1867_v13  ;;  %3961 = vmatprep.subr.bf16.mxu1 %v4381_v1  ;;  %v4244_v13 = vld [vmem:[%s5387_s3 + $0x78] sm:$0xff]  }
 0x920   :  { %3936 = vmatpush3.bf16.msra.mxu0 %v4235_v43 }
 0x921   :  { %3898 = vmatmul.mubr.bf16.vlgmr.msra.gmra.mrb[20].mxu1 %v2100_v14  ;;  %3941 = vmatprep.subr.bf16.mxu0 %v4381_v1 }
 0x922   :  { %3977 = vmatprep.mubr.msk.bf16.mxu1 %vm4382_vm0, %v4381_v1  ;;  %3962 = vmatpush3.bf16.msra.mxu1 %v4222_v16 }
 0x923   :  { %3963 = vmatprep.subr.bf16.mxu1 %v4381_v1 }
 0x926   :  { %3964 = vmatpush3.bf16.msra.mxu1 %v4224_v18  ;;  %v4245_v18 = vld [vmem:[%s5386_s2] sm:$0xff]  }
 0x927   :  { %3965 = vmatprep.subr.bf16.mxu1 %v4381_v1 }
 0x92a   :  { %3966 = vmatpush3.bf16.msra.mxu1 %v4226_v28 }
 0x92b   :  { %3967 = vmatprep.subr.bf16.mxu1 %v4381_v1 }
 0x92e   :  { %3968 = vmatpush3.bf16.msra.mxu1 %v4228_v31  ;;  %v4249_v31 = vld [vmem:[%s5386_s2 + $0x20] sm:$0xff]  }
 0x92f   :  { %3969 = vmatprep.subr.bf16.mxu1 %v4381_v1 }
 0x932   :  { %3970 = vmatpush3.bf16.msra.mxu1 %v4230_v33 }
 0x933   :  { %3971 = vmatprep.subr.bf16.mxu1 %v4381_v1 }
 0x936   :  { %3972 = vmatpush3.bf16.msra.mxu1 %v4232_v35 }
 0x937   :  { %3973 = vmatprep.subr.bf16.mxu1 %v4381_v1 }
 0x93a   :  { %3974 = vmatpush3.bf16.msra.mxu1 %v4234_v40 }
 0x93b   :  { %3975 = vmatprep.subr.bf16.mxu1 %v4381_v1 }
 0x93e   :  { %3976 = vmatpush3.bf16.msra.mxu1 %v4236_v49 }
 0x93f   :  { %3981 = vmatprep.subr.bf16.mxu1 %v4381_v1 }
 0x9d4   :  { %v2325_v21 = vpop.f32.mrb[28].mxu0 }
 0x9d5   :  { %v2331_v22 = vadd.f32 %v2325_v21, %v2226_v20  ;;  %v3919_v23 = vpop.f32.mrb[29].mxu0  ;;  %v4247_v20 = vld [vmem:[%s5386_s2 + $0x10] sm:$0xff]   ;;  %v2583_v21 = vld [vmem:[#allocation2 + $0x7] sm:$0x1] }
 0x9d6   :  { %v2328_v24 = vpop.f32.mrb[30].mxu0 }
 0x9d7   :  { %v3235_v25 = vmul.f32 -1.442695, %v2331_v22  ;;  %v3920_v26 = vpop.f32.mrb[31].mxu0 }
 0x9d9   :  { %4327 = vpow2.f32 %v3235_v25 }
 0x9e3   :  { %v4328_v27 = vpop.eup %4327 }
 0x9e4   :  { %v2335_v29 = vadd.f32 1.0, %v4328_v27 }
 0x9e6   :  { %4329 = vrcp.f32 %v2335_v29 }
 0x9f0   :  { %v4330_v36 = vpop.eup %4329 }
 0x9f1   :  { %2340 = vrot.lane.b32.xlu1 %v4330_v36, %s4385_s15  ;;  %v2338_v38 = vmul.f32 2.0, %v4330_v36 }
 0x9f3   :  { %v3236_v41 = vadd.f32 -1.0, %v2338_v38 }
 0x9f4   :  { %v2199_v42 = vpop.f32.mrb[20].mxu1 }
 0x9f5   :  { %v4026_v45 = vadd.f32 %v3192_v39, %v2199_v42  ;;  %v3899_v46 = vpop.f32.mrb[21].mxu1  ;;  %2344 = vrot.lane.b32.xlu1 %v4330_v36, %s4384_s14  ;;  %2342 = vrot.lane.b32.xlu0 %v3236_v41, %s4386_s20  ;;  %v4252_v39 = vld [vmem:[%s5386_s2 + $0x38] sm:$0xff]  }
 0x9f6   :  { %v2202_v47 = vpop.f32.mrb[22].mxu1 }
 0x9f7   :  { %v3225_v50 = vmul.f32 -1.442695, %v4026_v45  ;;  %v3900_v51 = vpop.f32.mrb[23].mxu1 }
 0x9f9   :  { %4331 = vpow2.f32 %v3225_v50 }
 0xa03   :  { %v4332_v53 = vpop.eup %4331 }
 0xa04   :  { %v2209_v44 = vadd.f32 1.0, %v4332_v53 }
 0xa06   :  { %4333 = vrcp.f32 %v2209_v44 }
 0xa10   :  { %v4334_v54 = vpop.eup %4333 }
 0xa11   :  { %2214 = vrot.lane.b32.xlu0 %v4334_v54, %s4385_s15  ;;  %v2212_v56 = vmul.f32 2.0, %v4334_v54 }
 0xa13   :  { %v3226_v48 = vadd.f32 -1.0, %v2212_v56 }
 0xa15   :  { %2216 = vrot.lane.b32.xlu1 %v3226_v48, %s4386_s20  ;;  %2218 = vrot.lane.b32.xlu0 %v4334_v54, %s4384_s14 }
 0xa63   :  { %v2341_v57 = vpop.permute.xlu1 %2340 }
 0xa64   :  { %v2346_v52 = vmul.f32 %v2341_v57, %v5129_v59  ;;  %v4238_v59 = vld [vmem:[%s5387_s3 + $0x48] sm:$0xff]  }
 0xa67   :  { %v2343_v60 = vpop.permute.xlu0 %2342  ;;  %v2345_v55 = vpop.permute.xlu1 %2344 }
 0xa68   :  { %v2347_v61 = vmul.f32 %v4330_v36, %v2343_v60  ;;  %v3237_v36 = vld [vmem:[%s5388_s4 + $0x1] sm:$0x1] }
 0xa6a   :  { %v5248_v63 = vadd.f32 %v2347_v61, %v2346_v52  ;;  %v4253_v61 = vld [vmem:[%s5387_s3 + $0x40] sm:$0xff]  }
 0xa6c   :  { %4335 = vtanh.f32 %v5248_v63 }
 0xa76   :  { %v4336_v58 = vpop.eup %4335 }
 0xa77   :  { %v2350_v0 = vmul.f32 %v4336_v58, %v2345_v55  ;;  %v4254_v55 = vld [vmem:[%s5387_s3 + $0x48] sm:$0xff]  }
 0xa79   :  { %v2351_v62 = vpack.c.bf16 %v2350_v0, %v2350_v0  ;;  %v4256_v0 = vld [vmem:[%s5387_s3 + $0x58] sm:$0xff]  }
 0xa7b   :  { %3938 = vmatmul.mubr.bf16.vlgmr.msra.gmra.mrb[32].mxu0 %v2351_v62  ;;  %3978 = vmatmul.mubr.bf16.vlgmr.msra.gmra.mrb[24].mxu1 %v2351_v62 }
 0xa7c   :  { %3942 = vmatpush3.bf16.msra.mxu0 %v4237_v3  ;;  %3957 = vmatprep.mubr.msk.bf16.mxu0 %vm4382_vm0, %v4381_v1 }
 0xa7d   :  { %3943 = vmatprep.subr.bf16.mxu0 %v4381_v1  ;;  %3997 = vmatprep.mubr.msk.bf16.mxu1 %vm4382_vm0, %v4381_v1 }
 0xa7e   :  { %3982 = vmatpush3.bf16.msra.mxu1 %v4245_v18 }
 0xa7f   :  { %3983 = vmatprep.subr.bf16.mxu1 %v4381_v1 }
 0xa80   :  { %3944 = vmatpush3.bf16.msra.mxu0 %v4238_v59 }
 0xa81   :  { %3945 = vmatprep.subr.bf16.mxu0 %v4381_v1 }
 0xa82   :  { %3984 = vmatpush3.bf16.msra.mxu1 %v4246_v19 }
 0xa83   :  { %v2215_v2 = vpop.permute.xlu0 %2214  ;;  %3985 = vmatprep.subr.bf16.mxu1 %v4381_v1 }
 0xa84   :  { %3946 = vmatpush3.bf16.msra.mxu0 %v4239_v4  ;;  %v2220_v9 = vmul.f32 %v2215_v2, %v5156_v8  ;;  %v4243_v8 = vld [vmem:[%s5387_s3 + $0x70] sm:$0xff]  }
 0xa85   :  { %3947 = vmatprep.subr.bf16.mxu0 %v4381_v1 }
 0xa86   :  { %3986 = vmatpush3.bf16.msra.mxu1 %v4247_v20 }
 0xa87   :  { %v2217_v7 = vpop.permute.xlu1 %2216  ;;  %v2219_v15 = vpop.permute.xlu0 %2218  ;;  %3987 = vmatprep.subr.bf16.mxu1 %v4381_v1 }
 0xa88   :  { %v2221_v5 = vmul.f32 %v4334_v54, %v2217_v7  ;;  %3948 = vmatpush3.bf16.msra.mxu0 %v4240_v6  ;;  %v4257_v6 = vld [vmem:[%s5387_s3 + $0x60] sm:$0xff]   ;;  %v4258_v7 = vld [vmem:[%s5387_s3 + $0x68] sm:$0xff]  }
 0xa89   :  { %3949 = vmatprep.subr.bf16.mxu0 %v4381_v1 }
 0xa8a   :  { %v5275_v11 = vadd.f32 %v2221_v5, %v2220_v9  ;;  %3988 = vmatpush3.bf16.msra.mxu1 %v4248_v30  ;;  %v4259_v9 = vld [vmem:[%s5387_s3 + $0x70] sm:$0xff]   ;;  %v4260_v5 = vld [vmem:[%s5387_s3 + $0x78] sm:$0xff]  }
 0xa8b   :  { %3989 = vmatprep.subr.bf16.mxu1 %v4381_v1 }
 0xa8c   :  { %4337 = vtanh.f32 %v5275_v11  ;;  %3950 = vmatpush3.bf16.msra.mxu0 %v4241_v10 }
 0xa8d   :  { %3951 = vmatprep.subr.bf16.mxu0 %v4381_v1 }
 0xa8e   :  { %3990 = vmatpush3.bf16.msra.mxu1 %v4249_v31 }
 0xa8f   :  { %3991 = vmatprep.subr.bf16.mxu1 %v4381_v1 }
 0xa90   :  { %3952 = vmatpush3.bf16.msra.mxu0 %v4242_v12 }
 0xa91   :  { %3953 = vmatprep.subr.bf16.mxu0 %v4381_v1 }
 0xa92   :  { %3992 = vmatpush3.bf16.msra.mxu1 %v4250_v32 }
 0xa93   :  { %3993 = vmatprep.subr.bf16.mxu1 %v4381_v1 }
 0xa94   :  { %3954 = vmatpush3.bf16.msra.mxu0 %v4243_v8 }
 0xa95   :  { %3955 = vmatprep.subr.bf16.mxu0 %v4381_v1 }
 0xa96   :  { %v4338_v14 = vpop.eup %4337  ;;  %3994 = vmatpush3.bf16.msra.mxu1 %v4251_v34 }
 0xa97   :  { %v2224_v16 = vmul.f32 %v4338_v14, %v2219_v15  ;;  %3995 = vmatprep.subr.bf16.mxu1 %v4381_v1 }
 0xa98   :  { %3956 = vmatpush3.bf16.msra.mxu0 %v4244_v13  ;;  %v3282_v13 = vld [vmem:[%s5388_s4 + $0x1] sm:$0x1] }
 0xa99   :  { %2225 = vst [vmem:[#allocation3 + $0x5] sm:$0x1] %v2224_v16  ;;  %v2457_v17 = vpack.c.bf16 %v2224_v16, %v2224_v16 }
 0xa9a   :  { %3996 = vmatpush3.bf16.msra.mxu1 %v4252_v39 }
 0xa9b   :  { %3958 = vmatmul.mubr.bf16.vlgmr.msra.gmra.mrb[32].mxu0 %v2457_v17  ;;  %4001 = vmatprep.subr.bf16.mxu1 %v4381_v1 }
 0xb4e   :  { %v2682_v22 = vpop.f32.mrb[24].mxu1 }
 0xb4f   :  { %v2688_v23 = vadd.f32 %v2682_v22, %v2583_v21  ;;  %v3979_v24 = vpop.f32.mrb[25].mxu1 }
 0xb50   :  { %v2685_v25 = vpop.f32.mrb[26].mxu1 }
 0xb51   :  { %v3280_v26 = vmul.f32 -1.442695, %v2688_v23  ;;  %v3980_v27 = vpop.f32.mrb[27].mxu1 }
 0xb53   :  { %4339 = vpow2.f32 %v3280_v26 }
 0xb5d   :  { %v4340_v28 = vpop.eup %4339 }
 0xb5e   :  { %v2692_v29 = vadd.f32 1.0, %v4340_v28 }
 0xb60   :  { %4341 = vrcp.f32 %v2692_v29 }
 0xb6a   :  { %v4342_v33 = vpop.eup %4341 }
 0xb6b   :  { %2697 = vrot.lane.b32.xlu1 %v4342_v33, %s4385_s15  ;;  %v2695_v35 = vmul.f32 2.0, %v4342_v33 }
 0xb6d   :  { %v3281_v37 = vadd.f32 -1.0, %v2695_v35 }
 0xb6e   :  { %v2556_v38 = vpop.f32.mrb[32].mxu0 }
 0xb6f   :  { %v4027_v40 = vadd.f32 %v3237_v36, %v2556_v38  ;;  %v3959_v41 = vpop.f32.mrb[33].mxu0  ;;  %2701 = vrot.lane.b32.xlu1 %v4342_v33, %s4384_s14  ;;  %2699 = vrot.lane.b32.xlu0 %v3281_v37, %s4386_s20 }
 0xb70   :  { %v2559_v42 = vpop.f32.mrb[34].mxu0 }
 0xb71   :  { %v3270_v43 = vmul.f32 -1.442695, %v4027_v40  ;;  %v3960_v45 = vpop.f32.mrb[35].mxu0 }
 0xb73   :  { %4343 = vpow2.f32 %v3270_v43 }
 0xb7d   :  { %v4344_v46 = vpop.eup %4343 }
 0xb7e   :  { %v2566_v47 = vadd.f32 1.0, %v4344_v46 }
 0xb80   :  { %4345 = vrcp.f32 %v2566_v47 }
 0xb8a   :  { %v4346_v49 = vpop.eup %4345 }
 0xb8b   :  { %2571 = vrot.lane.b32.xlu0 %v4346_v49, %s4385_s15  ;;  %v2569_v50 = vmul.f32 2.0, %v4346_v49 }
 0xb8d   :  { %v3271_v51 = vadd.f32 -1.0, %v2569_v50 }
 0xb8f   :  { %2575 = vrot.lane.b32.xlu0 %v4346_v49, %s4384_s14  ;;  %2573 = vrot.lane.b32.xlu1 %v3271_v51, %s4386_s20 }
 0xbdd   :  { %v2698_v53 = vpop.permute.xlu1 %2697 }
 0xbde   :  { %v2703_v54 = vmul.f32 %v2698_v53, %v5248_v63  ;;  %v4255_v63 = vld [vmem:[%s5387_s3 + $0x50] sm:$0xff]   ;;  %s4387_s3 = smov [#allocation3]  }
 0xbdf   :  { %s2946_s4 = sshll.u32 %s4387_s3, 4  ;;  %s2947_s4 = int_to_ptr.vmem [resolvable:$true] %s2946_s4 }
 0xbe0   :  { %p4362_p1 = scmp.lt.s32.totalorder %s2947_s4, %s2947_s4 }
 0xbe1   :  { %v2700_v44 = vpop.permute.xlu0 %2699  ;;  %v2702_v60 = vpop.permute.xlu1 %2701 }
 0xbe2   :  { %v2704_v56 = vmul.f32 %v4342_v33, %v2700_v44 }
 0xbe4   :  { %v2705_v48 = vadd.f32 %v2704_v56, %v2703_v54 }
 0xbe6   :  { %4347 = vtanh.f32 %v2705_v48 }
 0xbf0   :  { %v4348_v57 = vpop.eup %4347 }
 0xbf1   :  { %v2707_v52 = vmul.f32 %v4348_v57, %v2702_v60 }
 0xbf3   :  { %v2708_v58 = vpack.c.bf16 %v2707_v52, %v2707_v52 }
 0xbf5   :  { %3998 = vmatmul.mubr.bf16.vlgmr.msra.gmra.mrb[28].mxu1 %v2708_v58 }
 0xbf6   :  { %4002 = vmatpush3.bf16.msra.mxu1 %v4253_v61  ;;  %4017 = vmatprep.mubr.msk.bf16.mxu1 %vm4382_vm0, %v4381_v1 }
 0xbf7   :  { %4003 = vmatprep.subr.bf16.mxu1 %v4381_v1 }
 0xbfa   :  { %4004 = vmatpush3.bf16.msra.mxu1 %v4254_v55 }
 0xbfb   :  { %4005 = vmatprep.subr.bf16.mxu1 %v4381_v1 }
 0xbfd   :  { %v2572_v3 = vpop.permute.xlu0 %2571 }
 0xbfe   :  { %4006 = vmatpush3.bf16.msra.mxu1 %v4255_v63  ;;  %v2577_v59 = vmul.f32 %v2572_v3, %v5275_v11 }
 0xbff   :  { %4007 = vmatprep.subr.bf16.mxu1 %v4381_v1 }
 0xc01   :  { %v2574_v62 = vpop.permute.xlu1 %2573  ;;  %v2576_v11 = vpop.permute.xlu0 %2575 }
 0xc02   :  { %v2578_v4 = vmul.f32 %v4346_v49, %v2574_v62  ;;  %4008 = vmatpush3.bf16.msra.mxu1 %v4256_v0 }
 0xc03   :  { %4009 = vmatprep.subr.bf16.mxu1 %v4381_v1 }
 0xc04   :  { %v2579_v2 = vadd.f32 %v2578_v4, %v2577_v59 }
 0xc06   :  { %4349 = vtanh.f32 %v2579_v2  ;;  %4010 = vmatpush3.bf16.msra.mxu1 %v4257_v6 }
 0xc07   :  { %4011 = vmatprep.subr.bf16.mxu1 %v4381_v1 }
 0xc0a   :  { %4012 = vmatpush3.bf16.msra.mxu1 %v4258_v7 }
 0xc0b   :  { %4013 = vmatprep.subr.bf16.mxu1 %v4381_v1 }
 0xc0e   :  { %4014 = vmatpush3.bf16.msra.mxu1 %v4259_v9 }
 0xc0f   :  { %4015 = vmatprep.subr.bf16.mxu1 %v4381_v1 }
 0xc10   :  { %v4350_v10 = vpop.eup %4349 }
 0xc11   :  { %v2581_v12 = vmul.f32 %v4350_v10, %v2576_v11 }
 0xc12   :  { %4016 = vmatpush3.bf16.msra.mxu1 %v4260_v5 }
 0xc13   :  { %2582 = vst [vmem:[#allocation3 + $0x6] sm:$0x1] %v2581_v12  ;;  %v2814_v8 = vpack.c.bf16 %v2581_v12, %v2581_v12 }
 0xc15   :  { %4018 = vmatmul.mubr.bf16.vlgmr.msra.gmra.mrb[28].mxu1 %v2814_v8 }
 0xce8   :  { %v2913_v14 = vpop.f32.mrb[28].mxu1 }
 0xce9   :  { %v4028_v15 = vadd.f32 %v3282_v13, %v2913_v14  ;;  %v4019_v16 = vpop.f32.mrb[29].mxu1 }
 0xcea   :  { %v2916_v17 = vpop.f32.mrb[30].mxu1 }
 0xceb   :  { %v3315_v18 = vmul.f32 -1.442695, %v4028_v15  ;;  %v4020_v19 = vpop.f32.mrb[31].mxu1 }
 0xced   :  { %4351 = vpow2.f32 %v3315_v18 }
 0xcf7   :  { %v4352_v20 = vpop.eup %4351 }
 0xcf8   :  { %v2923_v1 = vadd.f32 1.0, %v4352_v20 }
 0xcfa   :  { %4353 = vrcp.f32 %v2923_v1 }
 0xd04   :  { %v4354_v21 = vpop.eup %4353 }
 0xd05   :  { %2928 = vrot.lane.b32.xlu1 %v4354_v21, %s4385_s15  ;;  %v2926_v22 = vmul.f32 2.0, %v4354_v21  ;;  %s4357_s15 = scalar_lea.vmem %s2947_s4, 128 }
 0xd06   :  { %p4358_p0 = scmp.ne.s32.totalorder %s2947_s4, %s4357_s15  ;;  %p4363_p2 = scmp.lt.s32.totalorder %s4357_s15, %s4357_s15 }
 0xd07   :  { %v3316_v23 = vadd.f32 -1.0, %v2926_v22 }
 0xd08   :  { %p4364_p3 = por %p4363_p2, %p4362_p1 }
 0xd09   :  { %2932 = vrot.lane.b32.xlu1 %v4354_v21, %s4384_s14  ;;  %2930 = vrot.lane.b32.xlu0 %v3316_v23, %s4386_s20 }
 0xd0a   :  { %p4365_p4 = pnand %p4364_p3, %p4358_p0 }
 0xd77   :  { %v2929_v24 = vpop.permute.xlu1 %2928 }
 0xd78   :  { %v2934_v26 = vmul.f32 %v2929_v24, %v2579_v2 }
 0xd7b   :  { %v2931_v25 = vpop.permute.xlu0 %2930  ;;  %v2933_v30 = vpop.permute.xlu1 %2932 }
 0xd7c   :  { %v2935_v27 = vmul.f32 %v4354_v21, %v2931_v25 }
 0xd7e   :  { %v2936_v28 = vadd.f32 %v2935_v27, %v2934_v26 }
 0xd80   :  { %4355 = vtanh.f32 %v2936_v28 }
 0xd8a   :  { %v4356_v29 = vpop.eup %4355 }
 0xd8b   :  { %v2938_v31 = vmul.f32 %v4356_v29, %v2933_v30 }
 0xd8d   :  { %2939 = vst [vmem:[#allocation3 + $0x7] sm:$0x1] %v2938_v31 }
 0xd8e   :  { %4368 = shalt.err (!%p4365_p4)
}
 0xd8f   :  { %s4369_s9 = scalar_lea.hbm %s5389_s5, 128 }
 0xd90   :  { %p4370_p5 = scmp.ne.s32.totalorder %s5389_s5, %s4369_s9  ;;  %p4373_p6 = scmp.lt.u32.totalorder %s4369_s9, %s5389_s5 }
 0xd92   :  { %p4375_p7 = pnand %p4373_p6, %p4370_p5 }
 0xd94   :  { %4378 = shalt.err (!%p4375_p7)
}
 0xd95   :  { %2949 = dma.vmem_to_hbm [thread:$0]  %s2947_s4, 128, %s5389_s5, [#allocation4]  }
 0xd96   :  { %4379 = dma.done.wait [#allocation4], 128  }
 0xd97   :  { %4380 = vsyncadd [#allocation4], 4294967168 }
 0xd98   :  { %2953 = vsyncpa [#allocation4], 1 }

</bundles_post_ra>
